<compile_context>
chip_gen: v6e
topology: v6e:2x2x1
jax: 0.10.0
libtpu: 0.0.40
codegen_flags: <defaults>
</compile_context>

<pallas_src>
import functools

import jax
import jax.numpy as jnp
from jax import lax
from jax.experimental import pallas as pl
from jax.experimental.pallas import tpu as pltpu


_EPS = 1e-6  # matches nn.LayerNorm(..., eps=1e-06)


# ---------------------------------------------------------------------------
# In-kernel helpers (traced inside the Pallas body)
# ---------------------------------------------------------------------------
def _layernorm(h, gamma, beta, eps=_EPS):
    m = jnp.mean(h, axis=-1, keepdims=True)
    c = h - m
    v = jnp.mean(c * c, axis=-1, keepdims=True)
    return c * lax.rsqrt(v + eps) * gamma + beta


def _rows_to_graph(r, B, V):
    """[B*V, D] (batch-major rows) -> [V, B*D] (batch folded on the lane axis)."""
    return jnp.concatenate([r[b * V:(b + 1) * V, :] for b in range(B)], axis=1)


def _cheby_linear(Lm, g, w_flat, bias, B, D, K):
    """Chebyshev graph conv + fused Linear.

    g:      [V, B*D]  activation in graph layout (lane index = b*D + d)
    Lm:     [V, V]
    w_flat: [K*D, out] (row index = k*D + d)
    bias:   [1, out]
    Returns [B*V, out] in row layout (row index = b*V + v).
    """
    terms = [g]
    if K > 1:
        t0 = g
        t1 = jnp.dot(Lm, g, preferred_element_type=jnp.float32)
        terms.append(t1)
        for _ in range(2, K):
            t2 = 2.0 * jnp.dot(Lm, t1, preferred_element_type=jnp.float32) - t0
            terms.append(t2)
            t0, t1 = t1, t2
    # Build [B*V, K*D]: batch folded on sublanes, Chebyshev order folded on lanes.
    rows = jnp.concatenate(
        [jnp.concatenate([t[:, b * D:(b + 1) * D] for b in range(B)], axis=0)
         for t in terms],
        axis=1)
    return jnp.dot(rows, w_flat, preferred_element_type=jnp.float32) + bias


def _make_graph_layer_kernel(K, n_blocks):
    """One Pallas kernel == the whole GraphLayer (all res-blocks, statically unrolled)."""

    def kernel(*refs):
        x_ref, L_ref, vecs_ref = refs[0], refs[1], refs[2]
        w_refs = refs[3:3 + 3 * n_blocks]
        o_ref = refs[3 + 3 * n_blocks]

        B, V, _ = x_ref.shape
        Lm = L_ref[...]                                            # [V, V]

        # Two resident layouts of the activation (built from static slices/concats).
        g = jnp.concatenate([x_ref[b] for b in range(B)], axis=1)    # [V, B*Din]
        rows = jnp.concatenate([x_ref[b] for b in range(B)], axis=0)  # [B*V, Din]

        for blk in range(n_blocks):                                # static unroll
            w1 = w_refs[3 * blk][...]                              # [K*Din, mid]
            w2 = w_refs[3 * blk + 1][...]                          # [K*mid, out]
            ws = w_refs[3 * blk + 2][...]                          # [Din, out]
            vec = vecs_ref[blk]                                    # [8, D] packed vectors
            b1, g2, bt2 = vec[0:1], vec[1:2], vec[2:3]
            b2, bs, g3, bt3 = vec[3:4], vec[4:5], vec[5:6], vec[6:7]

            Din = ws.shape[0]
            mid = w1.shape[1]

            # (norm1/relu of the PyTorch forward is dead code -> omitted)

            h1 = _cheby_linear(Lm, g, w1, b1, B, Din, K)           # fc1  [B*V, mid]
            h1 = jnp.maximum(_layernorm(h1, g2, bt2), 0.0)         # norm2 + relu

            h1_g = _rows_to_graph(h1, B, V)                        # [V, B*mid]
            h2 = _cheby_linear(Lm, h1_g, w2, b2, B, mid, K)        # fc2  [B*V, out]
            # dropout(p=0.01): identity at inference.

            sc = jnp.dot(rows, ws, preferred_element_type=jnp.float32) + bs  # shortcut

            rows = _layernorm(h2 + sc, g3, bt3)                    # norm3
            if blk != n_blocks - 1:
                rows = jnp.maximum(rows, 0.0)                      # inter-block relu
                g = _rows_to_graph(rows, B, V)                     # next block's input

        # rows is [B*V, Dout] batch-major; write one [V, Dout] slab per batch.
        for b in range(B):
            o_ref[b] = rows[b * V:(b + 1) * V, :]

    return kernel


# ---------------------------------------------------------------------------
# Wrapper: the whole GraphLayer in one pallas_call
# ---------------------------------------------------------------------------
@functools.partial(jax.jit, static_argnames=("K",))
def graph_layer_forward(x, L, blocks, K):
    B, V, Din = x.shape
    n_blocks = len(blocks)
    out_dim = blocks[-1]["w2"].shape[2]
    vec_dim = blocks[0]["b1"].shape[1]      # mid_dim == out_dim in this module

    # Pack the seven [1, D] vectors per block into one [n_blocks, 8, D] slab.
    def pack(p):
        return jnp.concatenate(
            [p["b1"], p["g2"], p["bt2"], p["b2"], p["bs"], p["g3"], p["bt3"],
             jnp.zeros((1, vec_dim), jnp.float32)], axis=0)        # [8, D]
    vecs = jnp.stack([pack(p) for p in blocks], axis=0)            # [n_blocks, 8, D]

    # Pre-flatten the Chebyshev weight slabs to [K*in, out] (free reshape in XLA).
    weights = []
    for p in blocks:
        k_, i1, m1 = p["w1"].shape
        _, i2, o2 = p["w2"].shape
        weights += [p["w1"].reshape(k_ * i1, m1),
                    p["w2"].reshape(k_ * i2, o2),
                    p["ws"]]

    def full(shape):
        nd = len(shape)
        return pl.BlockSpec(shape, lambda i, nd=nd: (0,) * nd)

    in_specs = ([full((B, V, Din)), full((V, V)), full(vecs.shape)]
                + [full(w.shape) for w in weights])

    return pl.pallas_call(
        _make_graph_layer_kernel(K, n_blocks),
        out_shape=jax.ShapeDtypeStruct((B, V, out_dim), jnp.float32),
        grid=(1,),
        in_specs=in_specs,
        out_specs=full((B, V, out_dim)),
        compiler_params=pltpu.CompilerParams(dimension_semantics=("arbitrary",)),
    )(x, L, vecs, *weights)


# ---------------------------------------------------------------------------
# Deterministic parameter init (xavier_uniform for Linear, 0 bias,
# LayerNorm gamma=1 / beta=0 — matches weights_init behaviour)
# ---------------------------------------------------------------------------
def _xavier(key, fan_in, fan_out, shape):
    bound = (6.0 / (fan_in + fan_out)) ** 0.5
    return jax.random.uniform(key, shape, jnp.float32, -bound, bound)


def init_block(key, in_dim, mid_dim, out_dim, K):
    k1, k2, k3 = jax.random.split(key, 3)
    z = lambda d: jnp.zeros((1, d), jnp.float32)
    o = lambda d: jnp.ones((1, d), jnp.float32)
    return dict(
        w1=_xavier(k1, in_dim * K, mid_dim, (K, in_dim, mid_dim)), b1=z(mid_dim),
        g2=o(mid_dim), bt2=z(mid_dim),
        w2=_xavier(k2, mid_dim * K, out_dim, (K, mid_dim, out_dim)), b2=z(out_dim),
        ws=_xavier(k3, in_dim, out_dim, (in_dim, out_dim)), bs=z(out_dim),
        g3=o(out_dim), bt3=z(out_dim),
    )


# ---------------------------------------------------------------------------
# Pure-JAX reference (same math) for a correctness check
# ---------------------------------------------------------------------------
def _ref_cheby_linear(x, L, w, b, K):
    terms = [x]
    if K > 1:
        x0, x1 = x, jnp.einsum("uv,bvf->buf", L, x)
        terms.append(x1)
        for _ in range(2, K):
            x2 = 2.0 * jnp.einsum("uv,bvf->buf", L, x1) - x0
            terms.append(x2)
            x0, x1 = x1, x2
    out = b[None]
    for k in range(K):
        out = out + jnp.einsum("bvf,fo->bvo", terms[k], w[k])
    return out


def _ref_ln(h, g, b, eps=_EPS):
    m = jnp.mean(h, axis=-1, keepdims=True)
    c = h - m
    v = jnp.mean(c * c, axis=-1, keepdims=True)
    return c * lax.rsqrt(v + eps) * g + b


def ref_forward(x, L, blocks, K):
    for i, p in enumerate(blocks):
        h1 = _ref_cheby_linear(x, L, p["w1"], p["b1"], K)
        h1 = jnp.maximum(_ref_ln(h1, p["g2"], p["bt2"]), 0.0)
        h2 = _ref_cheby_linear(h1, L, p["w2"], p["b2"], K)
        sc = jnp.einsum("bvf,fo->bvo", x, p["ws"]) + p["bs"]
        x = _ref_ln(h2 + sc, p["g3"], p["bt3"])
        if i != len(blocks) - 1:
            x = jnp.maximum(x, 0.0)
    return x


# ---------------------------------------------------------------------------
if __name__ == "__main__":
    B, V, D = 2, 8, 32          # batch, vertices, feature dim (in_dim=out_dim=32)
    K = 2                       # graph_k
    N_LAYERS = 3                # graph_layer_num

    key = jax.random.PRNGKey(0)
    kx, kL, kp = jax.random.split(key, 3)

    verts_f = jax.random.normal(kx, (B, V, D), jnp.float32)

    # deterministic symmetric "Laplacian"
    A = jax.random.normal(kL, (V, V), jnp.float32) * 0.1
    graph_L = 0.5 * (A + A.T) + jnp.eye(V, dtype=jnp.float32)

    blocks = []
    pkeys = jax.random.split(kp, N_LAYERS)
    blocks.append(init_block(pkeys[0], D, D, D, K))
    for i in range(1, N_LAYERS):
        blocks.append(init_block(pkeys[i], D, D, D, K))

    out = graph_layer_forward(verts_f, graph_L, blocks, K)
    out = jax.block_until_ready(out)

    ref = jax.block_until_ready(ref_forward(verts_f, graph_L, blocks, K))
    assert out.shape == (B, V, D)
    assert jnp.allclose(out, ref, rtol=1e-3, atol=1e-3), "mismatch vs reference"

    print("KERNEL_OK")
</pallas_src>

<mosaic_0001>
module attributes {stable_mosaic.version = 11 : i64} {
  func.func @kernel(%arg0: i32, %arg1: memref<2x8x32xf32, #tpu.memory_space<vmem>>, %arg2: memref<8x8xf32, #tpu.memory_space<vmem>>, %arg3: memref<3x8x32xf32, #tpu.memory_space<vmem>>, %arg4: memref<64x32xf32, #tpu.memory_space<vmem>>, %arg5: memref<64x32xf32, #tpu.memory_space<vmem>>, %arg6: memref<32x32xf32, #tpu.memory_space<vmem>>, %arg7: memref<64x32xf32, #tpu.memory_space<vmem>>, %arg8: memref<64x32xf32, #tpu.memory_space<vmem>>, %arg9: memref<32x32xf32, #tpu.memory_space<vmem>>, %arg10: memref<64x32xf32, #tpu.memory_space<vmem>>, %arg11: memref<64x32xf32, #tpu.memory_space<vmem>>, %arg12: memref<32x32xf32, #tpu.memory_space<vmem>>, %arg13: memref<2x8x32xf32, #tpu.memory_space<vmem>>) attributes {dimension_semantics = [#tpu.dimension_semantics<arbitrary>], iteration_bounds = array<i64: 1>, scalar_prefetch = 0 : i64, scratch_operands = 0 : i64, tpu.core_type = #tpu.core_type<tc>, window_params = [{pipeline_mode = #tpu.pipeline_mode<synchronous>, transform_indices = @transform_0, window_bounds = array<i64: 2, 8, 32>}, {pipeline_mode = #tpu.pipeline_mode<synchronous>, transform_indices = @transform_1, window_bounds = array<i64: 8, 8>}, {pipeline_mode = #tpu.pipeline_mode<synchronous>, transform_indices = @transform_2, window_bounds = array<i64: 3, 8, 32>}, {pipeline_mode = #tpu.pipeline_mode<synchronous>, transform_indices = @transform_3, window_bounds = array<i64: 64, 32>}, {pipeline_mode = #tpu.pipeline_mode<synchronous>, transform_indices = @transform_4, window_bounds = array<i64: 64, 32>}, {pipeline_mode = #tpu.pipeline_mode<synchronous>, transform_indices = @transform_5, window_bounds = array<i64: 32, 32>}, {pipeline_mode = #tpu.pipeline_mode<synchronous>, transform_indices = @transform_6, window_bounds = array<i64: 64, 32>}, {pipeline_mode = #tpu.pipeline_mode<synchronous>, transform_indices = @transform_7, window_bounds = array<i64: 64, 32>}, {pipeline_mode = #tpu.pipeline_mode<synchronous>, transform_indices = @transform_8, window_bounds = array<i64: 32, 32>}, {pipeline_mode = #tpu.pipeline_mode<synchronous>, transform_indices = @transform_9, window_bounds = array<i64: 64, 32>}, {pipeline_mode = #tpu.pipeline_mode<synchronous>, transform_indices = @transform_10, window_bounds = array<i64: 64, 32>}, {pipeline_mode = #tpu.pipeline_mode<synchronous>, transform_indices = @transform_11, window_bounds = array<i64: 32, 32>}, {pipeline_mode = #tpu.pipeline_mode<synchronous>, transform_indices = @transform_12, window_bounds = array<i64: 2, 8, 32>}]} {
    %c0 = arith.constant 0 : index
    %c0_0 = arith.constant 0 : index
    %0 = vector.load %arg2[%c0, %c0_0] : memref<8x8xf32, #tpu.memory_space<vmem>>, vector<8x8xf32>
    %c0_1 = arith.constant 0 : index
    %c0_2 = arith.constant 0 : index
    %c0_3 = arith.constant 0 : index
    %1 = vector.load %arg1[%c0_1, %c0_2, %c0_3] : memref<2x8x32xf32, #tpu.memory_space<vmem>>, vector<1x8x32xf32>
    %2 = vector.shape_cast %1 : vector<1x8x32xf32> to vector<8x32xf32>
    %c1 = arith.constant 1 : index
    %c0_4 = arith.constant 0 : index
    %c0_5 = arith.constant 0 : index
    %3 = vector.load %arg1[%c1, %c0_4, %c0_5] : memref<2x8x32xf32, #tpu.memory_space<vmem>>, vector<1x8x32xf32>
    %4 = vector.shape_cast %3 : vector<1x8x32xf32> to vector<8x32xf32>
    %5 = tpu.concatenate %2, %4 in 1 : vector<8x32xf32>, vector<8x32xf32> -> vector<8x64xf32>
    %c0_6 = arith.constant 0 : index
    %c0_7 = arith.constant 0 : index
    %c0_8 = arith.constant 0 : index
    %6 = vector.load %arg1[%c0_6, %c0_7, %c0_8] : memref<2x8x32xf32, #tpu.memory_space<vmem>>, vector<1x8x32xf32>
    %7 = vector.shape_cast %6 : vector<1x8x32xf32> to vector<8x32xf32>
    %c1_9 = arith.constant 1 : index
    %c0_10 = arith.constant 0 : index
    %c0_11 = arith.constant 0 : index
    %8 = vector.load %arg1[%c1_9, %c0_10, %c0_11] : memref<2x8x32xf32, #tpu.memory_space<vmem>>, vector<1x8x32xf32>
    %9 = vector.shape_cast %8 : vector<1x8x32xf32> to vector<8x32xf32>
    %10 = tpu.concatenate %7, %9 in 0 : vector<8x32xf32>, vector<8x32xf32> -> vector<16x32xf32>
    %c0_12 = arith.constant 0 : index
    %c0_13 = arith.constant 0 : index
    %11 = vector.load %arg4[%c0_12, %c0_13] : memref<64x32xf32, #tpu.memory_space<vmem>>, vector<64x32xf32>
    %c0_14 = arith.constant 0 : index
    %c0_15 = arith.constant 0 : index
    %12 = vector.load %arg5[%c0_14, %c0_15] : memref<64x32xf32, #tpu.memory_space<vmem>>, vector<64x32xf32>
    %c0_16 = arith.constant 0 : index
    %c0_17 = arith.constant 0 : index
    %13 = vector.load %arg6[%c0_16, %c0_17] : memref<32x32xf32, #tpu.memory_space<vmem>>, vector<32x32xf32>
    %c0_18 = arith.constant 0 : index
    %c0_19 = arith.constant 0 : index
    %c0_20 = arith.constant 0 : index
    %14 = vector.load %arg3[%c0_18, %c0_19, %c0_20] : memref<3x8x32xf32, #tpu.memory_space<vmem>>, vector<1x8x32xf32>
    %15 = vector.shape_cast %14 : vector<1x8x32xf32> to vector<8x32xf32>
    %16 = vector.extract_strided_slice %15 {offsets = [0, 0], sizes = [1, 32], strides = [1, 1]} : vector<8x32xf32> to vector<1x32xf32>
    %17 = vector.extract_strided_slice %15 {offsets = [1, 0], sizes = [1, 32], strides = [1, 1]} : vector<8x32xf32> to vector<1x32xf32>
    %18 = vector.extract_strided_slice %15 {offsets = [2, 0], sizes = [1, 32], strides = [1, 1]} : vector<8x32xf32> to vector<1x32xf32>
    %19 = vector.extract_strided_slice %15 {offsets = [3, 0], sizes = [1, 32], strides = [1, 1]} : vector<8x32xf32> to vector<1x32xf32>
    %20 = vector.extract_strided_slice %15 {offsets = [4, 0], sizes = [1, 32], strides = [1, 1]} : vector<8x32xf32> to vector<1x32xf32>
    %21 = vector.extract_strided_slice %15 {offsets = [5, 0], sizes = [1, 32], strides = [1, 1]} : vector<8x32xf32> to vector<1x32xf32>
    %22 = vector.extract_strided_slice %15 {offsets = [6, 0], sizes = [1, 32], strides = [1, 1]} : vector<8x32xf32> to vector<1x32xf32>
    %cst = arith.constant dense<0.000000e+00> : vector<8x64xf32>
    %23 = tpu.matmul %0, %5, %cst {dimension_numbers = #tpu.dot_dimension_numbers<[1], [0], [0], [1], [0, 0, 1, 1], [], []>} : vector<8x8xf32>, vector<8x64xf32>, vector<8x64xf32> -> vector<8x64xf32>
    %24 = vector.extract_strided_slice %5 {offsets = [0, 0], sizes = [8, 32], strides = [1, 1]} : vector<8x64xf32> to vector<8x32xf32>
    %25 = vector.extract_strided_slice %5 {offsets = [0, 32], sizes = [8, 32], strides = [1, 1]} : vector<8x64xf32> to vector<8x32xf32>
    %26 = tpu.concatenate %24, %25 in 0 : vector<8x32xf32>, vector<8x32xf32> -> vector<16x32xf32>
    %27 = vector.extract_strided_slice %23 {offsets = [0, 0], sizes = [8, 32], strides = [1, 1]} : vector<8x64xf32> to vector<8x32xf32>
    %28 = vector.extract_strided_slice %23 {offsets = [0, 32], sizes = [8, 32], strides = [1, 1]} : vector<8x64xf32> to vector<8x32xf32>
    %29 = tpu.concatenate %27, %28 in 0 : vector<8x32xf32>, vector<8x32xf32> -> vector<16x32xf32>
    %30 = tpu.concatenate %26, %29 in 1 : vector<16x32xf32>, vector<16x32xf32> -> vector<16x64xf32>
    %cst_21 = arith.constant dense<0.000000e+00> : vector<16x32xf32>
    %31 = tpu.matmul %30, %11, %cst_21 {dimension_numbers = #tpu.dot_dimension_numbers<[1], [0], [0], [1], [0, 0, 1, 1], [], []>} : vector<16x64xf32>, vector<64x32xf32>, vector<16x32xf32> -> vector<16x32xf32>
    %32 = vector.broadcast %16 : vector<1x32xf32> to vector<16x32xf32>
    %33 = arith.addf %31, %32 : vector<16x32xf32>
    %cst_22 = arith.constant dense<0.000000e+00> : vector<16xf32>
    %34 = vector.multi_reduction <add>, %33, %cst_22 [1] : vector<16x32xf32> to vector<16xf32>
    %35 = vector.shape_cast %34 : vector<16xf32> to vector<16x1xf32>
    %cst_23 = arith.constant 3.200000e+01 : f32
    %36 = vector.broadcast %cst_23 : f32 to vector<16x1xf32>
    %37 = arith.divf %35, %36 : vector<16x1xf32>
    %38 = vector.broadcast %37 : vector<16x1xf32> to vector<16x32xf32>
    %39 = arith.subf %33, %38 : vector<16x32xf32>
    %40 = arith.mulf %39, %39 : vector<16x32xf32>
    %cst_24 = arith.constant dense<0.000000e+00> : vector<16xf32>
    %41 = vector.multi_reduction <add>, %40, %cst_24 [1] : vector<16x32xf32> to vector<16xf32>
    %42 = vector.shape_cast %41 : vector<16xf32> to vector<16x1xf32>
    %cst_25 = arith.constant 3.200000e+01 : f32
    %43 = vector.broadcast %cst_25 : f32 to vector<16x1xf32>
    %44 = arith.divf %42, %43 : vector<16x1xf32>
    %cst_26 = arith.constant 9.99999997E-7 : f32
    %45 = vector.broadcast %cst_26 : f32 to vector<16x1xf32>
    %46 = arith.addf %44, %45 : vector<16x1xf32>
    %47 = math.rsqrt %46 : vector<16x1xf32>
    %48 = vector.broadcast %47 : vector<16x1xf32> to vector<16x32xf32>
    %49 = arith.mulf %39, %48 : vector<16x32xf32>
    %50 = vector.broadcast %17 : vector<1x32xf32> to vector<16x32xf32>
    %51 = arith.mulf %49, %50 : vector<16x32xf32>
    %52 = vector.broadcast %18 : vector<1x32xf32> to vector<16x32xf32>
    %53 = arith.addf %51, %52 : vector<16x32xf32>
    %cst_27 = arith.constant 0.000000e+00 : f32
    %54 = vector.broadcast %cst_27 : f32 to vector<16x32xf32>
    %55 = arith.maximumf %53, %54 : vector<16x32xf32>
    %56 = vector.extract_strided_slice %55 {offsets = [0, 0], sizes = [8, 32], strides = [1, 1]} : vector<16x32xf32> to vector<8x32xf32>
    %57 = vector.extract_strided_slice %55 {offsets = [8, 0], sizes = [8, 32], strides = [1, 1]} : vector<16x32xf32> to vector<8x32xf32>
    %58 = tpu.concatenate %56, %57 in 1 : vector<8x32xf32>, vector<8x32xf32> -> vector<8x64xf32>
    %cst_28 = arith.constant dense<0.000000e+00> : vector<8x64xf32>
    %59 = tpu.matmul %0, %58, %cst_28 {dimension_numbers = #tpu.dot_dimension_numbers<[1], [0], [0], [1], [0, 0, 1, 1], [], []>} : vector<8x8xf32>, vector<8x64xf32>, vector<8x64xf32> -> vector<8x64xf32>
    %60 = vector.extract_strided_slice %58 {offsets = [0, 0], sizes = [8, 32], strides = [1, 1]} : vector<8x64xf32> to vector<8x32xf32>
    %61 = vector.extract_strided_slice %58 {offsets = [0, 32], sizes = [8, 32], strides = [1, 1]} : vector<8x64xf32> to vector<8x32xf32>
    %62 = tpu.concatenate %60, %61 in 0 : vector<8x32xf32>, vector<8x32xf32> -> vector<16x32xf32>
    %63 = vector.extract_strided_slice %59 {offsets = [0, 0], sizes = [8, 32], strides = [1, 1]} : vector<8x64xf32> to vector<8x32xf32>
    %64 = vector.extract_strided_slice %59 {offsets = [0, 32], sizes = [8, 32], strides = [1, 1]} : vector<8x64xf32> to vector<8x32xf32>
    %65 = tpu.concatenate %63, %64 in 0 : vector<8x32xf32>, vector<8x32xf32> -> vector<16x32xf32>
    %66 = tpu.concatenate %62, %65 in 1 : vector<16x32xf32>, vector<16x32xf32> -> vector<16x64xf32>
    %cst_29 = arith.constant dense<0.000000e+00> : vector<16x32xf32>
    %67 = tpu.matmul %66, %12, %cst_29 {dimension_numbers = #tpu.dot_dimension_numbers<[1], [0], [0], [1], [0, 0, 1, 1], [], []>} : vector<16x64xf32>, vector<64x32xf32>, vector<16x32xf32> -> vector<16x32xf32>
    %68 = vector.broadcast %19 : vector<1x32xf32> to vector<16x32xf32>
    %69 = arith.addf %67, %68 : vector<16x32xf32>
    %cst_30 = arith.constant dense<0.000000e+00> : vector<16x32xf32>
    %70 = tpu.matmul %10, %13, %cst_30 {dimension_numbers = #tpu.dot_dimension_numbers<[1], [0], [0], [1], [0, 0, 1, 1], [], []>} : vector<16x32xf32>, vector<32x32xf32>, vector<16x32xf32> -> vector<16x32xf32>
    %71 = vector.broadcast %20 : vector<1x32xf32> to vector<16x32xf32>
    %72 = arith.addf %70, %71 : vector<16x32xf32>
    %73 = arith.addf %69, %72 : vector<16x32xf32>
    %cst_31 = arith.constant dense<0.000000e+00> : vector<16xf32>
    %74 = vector.multi_reduction <add>, %73, %cst_31 [1] : vector<16x32xf32> to vector<16xf32>
    %75 = vector.shape_cast %74 : vector<16xf32> to vector<16x1xf32>
    %cst_32 = arith.constant 3.200000e+01 : f32
    %76 = vector.broadcast %cst_32 : f32 to vector<16x1xf32>
    %77 = arith.divf %75, %76 : vector<16x1xf32>
    %78 = vector.broadcast %77 : vector<16x1xf32> to vector<16x32xf32>
    %79 = arith.subf %73, %78 : vector<16x32xf32>
    %80 = arith.mulf %79, %79 : vector<16x32xf32>
    %cst_33 = arith.constant dense<0.000000e+00> : vector<16xf32>
    %81 = vector.multi_reduction <add>, %80, %cst_33 [1] : vector<16x32xf32> to vector<16xf32>
    %82 = vector.shape_cast %81 : vector<16xf32> to vector<16x1xf32>
    %cst_34 = arith.constant 3.200000e+01 : f32
    %83 = vector.broadcast %cst_34 : f32 to vector<16x1xf32>
    %84 = arith.divf %82, %83 : vector<16x1xf32>
    %cst_35 = arith.constant 9.99999997E-7 : f32
    %85 = vector.broadcast %cst_35 : f32 to vector<16x1xf32>
    %86 = arith.addf %84, %85 : vector<16x1xf32>
    %87 = math.rsqrt %86 : vector<16x1xf32>
    %88 = vector.broadcast %87 : vector<16x1xf32> to vector<16x32xf32>
    %89 = arith.mulf %79, %88 : vector<16x32xf32>
    %90 = vector.broadcast %21 : vector<1x32xf32> to vector<16x32xf32>
    %91 = arith.mulf %89, %90 : vector<16x32xf32>
    %92 = vector.broadcast %22 : vector<1x32xf32> to vector<16x32xf32>
    %93 = arith.addf %91, %92 : vector<16x32xf32>
    %cst_36 = arith.constant 0.000000e+00 : f32
    %94 = vector.broadcast %cst_36 : f32 to vector<16x32xf32>
    %95 = arith.maximumf %93, %94 : vector<16x32xf32>
    %96 = vector.extract_strided_slice %95 {offsets = [0, 0], sizes = [8, 32], strides = [1, 1]} : vector<16x32xf32> to vector<8x32xf32>
    %97 = vector.extract_strided_slice %95 {offsets = [8, 0], sizes = [8, 32], strides = [1, 1]} : vector<16x32xf32> to vector<8x32xf32>
    %98 = tpu.concatenate %96, %97 in 1 : vector<8x32xf32>, vector<8x32xf32> -> vector<8x64xf32>
    %c0_37 = arith.constant 0 : index
    %c0_38 = arith.constant 0 : index
    %99 = vector.load %arg7[%c0_37, %c0_38] : memref<64x32xf32, #tpu.memory_space<vmem>>, vector<64x32xf32>
    %c0_39 = arith.constant 0 : index
    %c0_40 = arith.constant 0 : index
    %100 = vector.load %arg8[%c0_39, %c0_40] : memref<64x32xf32, #tpu.memory_space<vmem>>, vector<64x32xf32>
    %c0_41 = arith.constant 0 : index
    %c0_42 = arith.constant 0 : index
    %101 = vector.load %arg9[%c0_41, %c0_42] : memref<32x32xf32, #tpu.memory_space<vmem>>, vector<32x32xf32>
    %c1_43 = arith.constant 1 : index
    %c0_44 = arith.constant 0 : index
    %c0_45 = arith.constant 0 : index
    %102 = vector.load %arg3[%c1_43, %c0_44, %c0_45] : memref<3x8x32xf32, #tpu.memory_space<vmem>>, vector<1x8x32xf32>
    %103 = vector.shape_cast %102 : vector<1x8x32xf32> to vector<8x32xf32>
    %104 = vector.extract_strided_slice %103 {offsets = [0, 0], sizes = [1, 32], strides = [1, 1]} : vector<8x32xf32> to vector<1x32xf32>
    %105 = vector.extract_strided_slice %103 {offsets = [1, 0], sizes = [1, 32], strides = [1, 1]} : vector<8x32xf32> to vector<1x32xf32>
    %106 = vector.extract_strided_slice %103 {offsets = [2, 0], sizes = [1, 32], strides = [1, 1]} : vector<8x32xf32> to vector<1x32xf32>
    %107 = vector.extract_strided_slice %103 {offsets = [3, 0], sizes = [1, 32], strides = [1, 1]} : vector<8x32xf32> to vector<1x32xf32>
    %108 = vector.extract_strided_slice %103 {offsets = [4, 0], sizes = [1, 32], strides = [1, 1]} : vector<8x32xf32> to vector<1x32xf32>
    %109 = vector.extract_strided_slice %103 {offsets = [5, 0], sizes = [1, 32], strides = [1, 1]} : vector<8x32xf32> to vector<1x32xf32>
    %110 = vector.extract_strided_slice %103 {offsets = [6, 0], sizes = [1, 32], strides = [1, 1]} : vector<8x32xf32> to vector<1x32xf32>
    %cst_46 = arith.constant dense<0.000000e+00> : vector<8x64xf32>
    %111 = tpu.matmul %0, %98, %cst_46 {dimension_numbers = #tpu.dot_dimension_numbers<[1], [0], [0], [1], [0, 0, 1, 1], [], []>} : vector<8x8xf32>, vector<8x64xf32>, vector<8x64xf32> -> vector<8x64xf32>
    %112 = vector.extract_strided_slice %98 {offsets = [0, 0], sizes = [8, 32], strides = [1, 1]} : vector<8x64xf32> to vector<8x32xf32>
    %113 = vector.extract_strided_slice %98 {offsets = [0, 32], sizes = [8, 32], strides = [1, 1]} : vector<8x64xf32> to vector<8x32xf32>
    %114 = tpu.concatenate %112, %113 in 0 : vector<8x32xf32>, vector<8x32xf32> -> vector<16x32xf32>
    %115 = vector.extract_strided_slice %111 {offsets = [0, 0], sizes = [8, 32], strides = [1, 1]} : vector<8x64xf32> to vector<8x32xf32>
    %116 = vector.extract_strided_slice %111 {offsets = [0, 32], sizes = [8, 32], strides = [1, 1]} : vector<8x64xf32> to vector<8x32xf32>
    %117 = tpu.concatenate %115, %116 in 0 : vector<8x32xf32>, vector<8x32xf32> -> vector<16x32xf32>
    %118 = tpu.concatenate %114, %117 in 1 : vector<16x32xf32>, vector<16x32xf32> -> vector<16x64xf32>
    %cst_47 = arith.constant dense<0.000000e+00> : vector<16x32xf32>
    %119 = tpu.matmul %118, %99, %cst_47 {dimension_numbers = #tpu.dot_dimension_numbers<[1], [0], [0], [1], [0, 0, 1, 1], [], []>} : vector<16x64xf32>, vector<64x32xf32>, vector<16x32xf32> -> vector<16x32xf32>
    %120 = vector.broadcast %104 : vector<1x32xf32> to vector<16x32xf32>
    %121 = arith.addf %119, %120 : vector<16x32xf32>
    %cst_48 = arith.constant dense<0.000000e+00> : vector<16xf32>
    %122 = vector.multi_reduction <add>, %121, %cst_48 [1] : vector<16x32xf32> to vector<16xf32>
    %123 = vector.shape_cast %122 : vector<16xf32> to vector<16x1xf32>
    %cst_49 = arith.constant 3.200000e+01 : f32
    %124 = vector.broadcast %cst_49 : f32 to vector<16x1xf32>
    %125 = arith.divf %123, %124 : vector<16x1xf32>
    %126 = vector.broadcast %125 : vector<16x1xf32> to vector<16x32xf32>
    %127 = arith.subf %121, %126 : vector<16x32xf32>
    %128 = arith.mulf %127, %127 : vector<16x32xf32>
    %cst_50 = arith.constant dense<0.000000e+00> : vector<16xf32>
    %129 = vector.multi_reduction <add>, %128, %cst_50 [1] : vector<16x32xf32> to vector<16xf32>
    %130 = vector.shape_cast %129 : vector<16xf32> to vector<16x1xf32>
    %cst_51 = arith.constant 3.200000e+01 : f32
    %131 = vector.broadcast %cst_51 : f32 to vector<16x1xf32>
    %132 = arith.divf %130, %131 : vector<16x1xf32>
    %cst_52 = arith.constant 9.99999997E-7 : f32
    %133 = vector.broadcast %cst_52 : f32 to vector<16x1xf32>
    %134 = arith.addf %132, %133 : vector<16x1xf32>
    %135 = math.rsqrt %134 : vector<16x1xf32>
    %136 = vector.broadcast %135 : vector<16x1xf32> to vector<16x32xf32>
    %137 = arith.mulf %127, %136 : vector<16x32xf32>
    %138 = vector.broadcast %105 : vector<1x32xf32> to vector<16x32xf32>
    %139 = arith.mulf %137, %138 : vector<16x32xf32>
    %140 = vector.broadcast %106 : vector<1x32xf32> to vector<16x32xf32>
    %141 = arith.addf %139, %140 : vector<16x32xf32>
    %cst_53 = arith.constant 0.000000e+00 : f32
    %142 = vector.broadcast %cst_53 : f32 to vector<16x32xf32>
    %143 = arith.maximumf %141, %142 : vector<16x32xf32>
    %144 = vector.extract_strided_slice %143 {offsets = [0, 0], sizes = [8, 32], strides = [1, 1]} : vector<16x32xf32> to vector<8x32xf32>
    %145 = vector.extract_strided_slice %143 {offsets = [8, 0], sizes = [8, 32], strides = [1, 1]} : vector<16x32xf32> to vector<8x32xf32>
    %146 = tpu.concatenate %144, %145 in 1 : vector<8x32xf32>, vector<8x32xf32> -> vector<8x64xf32>
    %cst_54 = arith.constant dense<0.000000e+00> : vector<8x64xf32>
    %147 = tpu.matmul %0, %146, %cst_54 {dimension_numbers = #tpu.dot_dimension_numbers<[1], [0], [0], [1], [0, 0, 1, 1], [], []>} : vector<8x8xf32>, vector<8x64xf32>, vector<8x64xf32> -> vector<8x64xf32>
    %148 = vector.extract_strided_slice %146 {offsets = [0, 0], sizes = [8, 32], strides = [1, 1]} : vector<8x64xf32> to vector<8x32xf32>
    %149 = vector.extract_strided_slice %146 {offsets = [0, 32], sizes = [8, 32], strides = [1, 1]} : vector<8x64xf32> to vector<8x32xf32>
    %150 = tpu.concatenate %148, %149 in 0 : vector<8x32xf32>, vector<8x32xf32> -> vector<16x32xf32>
    %151 = vector.extract_strided_slice %147 {offsets = [0, 0], sizes = [8, 32], strides = [1, 1]} : vector<8x64xf32> to vector<8x32xf32>
    %152 = vector.extract_strided_slice %147 {offsets = [0, 32], sizes = [8, 32], strides = [1, 1]} : vector<8x64xf32> to vector<8x32xf32>
    %153 = tpu.concatenate %151, %152 in 0 : vector<8x32xf32>, vector<8x32xf32> -> vector<16x32xf32>
    %154 = tpu.concatenate %150, %153 in 1 : vector<16x32xf32>, vector<16x32xf32> -> vector<16x64xf32>
    %cst_55 = arith.constant dense<0.000000e+00> : vector<16x32xf32>
    %155 = tpu.matmul %154, %100, %cst_55 {dimension_numbers = #tpu.dot_dimension_numbers<[1], [0], [0], [1], [0, 0, 1, 1], [], []>} : vector<16x64xf32>, vector<64x32xf32>, vector<16x32xf32> -> vector<16x32xf32>
    %156 = vector.broadcast %107 : vector<1x32xf32> to vector<16x32xf32>
    %157 = arith.addf %155, %156 : vector<16x32xf32>
    %cst_56 = arith.constant dense<0.000000e+00> : vector<16x32xf32>
    %158 = tpu.matmul %95, %101, %cst_56 {dimension_numbers = #tpu.dot_dimension_numbers<[1], [0], [0], [1], [0, 0, 1, 1], [], []>} : vector<16x32xf32>, vector<32x32xf32>, vector<16x32xf32> -> vector<16x32xf32>
    %159 = vector.broadcast %108 : vector<1x32xf32> to vector<16x32xf32>
    %160 = arith.addf %158, %159 : vector<16x32xf32>
    %161 = arith.addf %157, %160 : vector<16x32xf32>
    %cst_57 = arith.constant dense<0.000000e+00> : vector<16xf32>
    %162 = vector.multi_reduction <add>, %161, %cst_57 [1] : vector<16x32xf32> to vector<16xf32>
    %163 = vector.shape_cast %162 : vector<16xf32> to vector<16x1xf32>
    %cst_58 = arith.constant 3.200000e+01 : f32
    %164 = vector.broadcast %cst_58 : f32 to vector<16x1xf32>
    %165 = arith.divf %163, %164 : vector<16x1xf32>
    %166 = vector.broadcast %165 : vector<16x1xf32> to vector<16x32xf32>
    %167 = arith.subf %161, %166 : vector<16x32xf32>
    %168 = arith.mulf %167, %167 : vector<16x32xf32>
    %cst_59 = arith.constant dense<0.000000e+00> : vector<16xf32>
    %169 = vector.multi_reduction <add>, %168, %cst_59 [1] : vector<16x32xf32> to vector<16xf32>
    %170 = vector.shape_cast %169 : vector<16xf32> to vector<16x1xf32>
    %cst_60 = arith.constant 3.200000e+01 : f32
    %171 = vector.broadcast %cst_60 : f32 to vector<16x1xf32>
    %172 = arith.divf %170, %171 : vector<16x1xf32>
    %cst_61 = arith.constant 9.99999997E-7 : f32
    %173 = vector.broadcast %cst_61 : f32 to vector<16x1xf32>
    %174 = arith.addf %172, %173 : vector<16x1xf32>
    %175 = math.rsqrt %174 : vector<16x1xf32>
    %176 = vector.broadcast %175 : vector<16x1xf32> to vector<16x32xf32>
    %177 = arith.mulf %167, %176 : vector<16x32xf32>
    %178 = vector.broadcast %109 : vector<1x32xf32> to vector<16x32xf32>
    %179 = arith.mulf %177, %178 : vector<16x32xf32>
    %180 = vector.broadcast %110 : vector<1x32xf32> to vector<16x32xf32>
    %181 = arith.addf %179, %180 : vector<16x32xf32>
    %cst_62 = arith.constant 0.000000e+00 : f32
    %182 = vector.broadcast %cst_62 : f32 to vector<16x32xf32>
    %183 = arith.maximumf %181, %182 : vector<16x32xf32>
    %184 = vector.extract_strided_slice %183 {offsets = [0, 0], sizes = [8, 32], strides = [1, 1]} : vector<16x32xf32> to vector<8x32xf32>
    %185 = vector.extract_strided_slice %183 {offsets = [8, 0], sizes = [8, 32], strides = [1, 1]} : vector<16x32xf32> to vector<8x32xf32>
    %186 = tpu.concatenate %184, %185 in 1 : vector<8x32xf32>, vector<8x32xf32> -> vector<8x64xf32>
    %c0_63 = arith.constant 0 : index
    %c0_64 = arith.constant 0 : index
    %187 = vector.load %arg10[%c0_63, %c0_64] : memref<64x32xf32, #tpu.memory_space<vmem>>, vector<64x32xf32>
    %c0_65 = arith.constant 0 : index
    %c0_66 = arith.constant 0 : index
    %188 = vector.load %arg11[%c0_65, %c0_66] : memref<64x32xf32, #tpu.memory_space<vmem>>, vector<64x32xf32>
    %c0_67 = arith.constant 0 : index
    %c0_68 = arith.constant 0 : index
    %189 = vector.load %arg12[%c0_67, %c0_68] : memref<32x32xf32, #tpu.memory_space<vmem>>, vector<32x32xf32>
    %c2 = arith.constant 2 : index
    %c0_69 = arith.constant 0 : index
    %c0_70 = arith.constant 0 : index
    %190 = vector.load %arg3[%c2, %c0_69, %c0_70] : memref<3x8x32xf32, #tpu.memory_space<vmem>>, vector<1x8x32xf32>
    %191 = vector.shape_cast %190 : vector<1x8x32xf32> to vector<8x32xf32>
    %192 = vector.extract_strided_slice %191 {offsets = [0, 0], sizes = [1, 32], strides = [1, 1]} : vector<8x32xf32> to vector<1x32xf32>
    %193 = vector.extract_strided_slice %191 {offsets = [1, 0], sizes = [1, 32], strides = [1, 1]} : vector<8x32xf32> to vector<1x32xf32>
    %194 = vector.extract_strided_slice %191 {offsets = [2, 0], sizes = [1, 32], strides = [1, 1]} : vector<8x32xf32> to vector<1x32xf32>
    %195 = vector.extract_strided_slice %191 {offsets = [3, 0], sizes = [1, 32], strides = [1, 1]} : vector<8x32xf32> to vector<1x32xf32>
    %196 = vector.extract_strided_slice %191 {offsets = [4, 0], sizes = [1, 32], strides = [1, 1]} : vector<8x32xf32> to vector<1x32xf32>
    %197 = vector.extract_strided_slice %191 {offsets = [5, 0], sizes = [1, 32], strides = [1, 1]} : vector<8x32xf32> to vector<1x32xf32>
    %198 = vector.extract_strided_slice %191 {offsets = [6, 0], sizes = [1, 32], strides = [1, 1]} : vector<8x32xf32> to vector<1x32xf32>
    %cst_71 = arith.constant dense<0.000000e+00> : vector<8x64xf32>
    %199 = tpu.matmul %0, %186, %cst_71 {dimension_numbers = #tpu.dot_dimension_numbers<[1], [0], [0], [1], [0, 0, 1, 1], [], []>} : vector<8x8xf32>, vector<8x64xf32>, vector<8x64xf32> -> vector<8x64xf32>
    %200 = vector.extract_strided_slice %186 {offsets = [0, 0], sizes = [8, 32], strides = [1, 1]} : vector<8x64xf32> to vector<8x32xf32>
    %201 = vector.extract_strided_slice %186 {offsets = [0, 32], sizes = [8, 32], strides = [1, 1]} : vector<8x64xf32> to vector<8x32xf32>
    %202 = tpu.concatenate %200, %201 in 0 : vector<8x32xf32>, vector<8x32xf32> -> vector<16x32xf32>
    %203 = vector.extract_strided_slice %199 {offsets = [0, 0], sizes = [8, 32], strides = [1, 1]} : vector<8x64xf32> to vector<8x32xf32>
    %204 = vector.extract_strided_slice %199 {offsets = [0, 32], sizes = [8, 32], strides = [1, 1]} : vector<8x64xf32> to vector<8x32xf32>
    %205 = tpu.concatenate %203, %204 in 0 : vector<8x32xf32>, vector<8x32xf32> -> vector<16x32xf32>
    %206 = tpu.concatenate %202, %205 in 1 : vector<16x32xf32>, vector<16x32xf32> -> vector<16x64xf32>
    %cst_72 = arith.constant dense<0.000000e+00> : vector<16x32xf32>
    %207 = tpu.matmul %206, %187, %cst_72 {dimension_numbers = #tpu.dot_dimension_numbers<[1], [0], [0], [1], [0, 0, 1, 1], [], []>} : vector<16x64xf32>, vector<64x32xf32>, vector<16x32xf32> -> vector<16x32xf32>
    %208 = vector.broadcast %192 : vector<1x32xf32> to vector<16x32xf32>
    %209 = arith.addf %207, %208 : vector<16x32xf32>
    %cst_73 = arith.constant dense<0.000000e+00> : vector<16xf32>
    %210 = vector.multi_reduction <add>, %209, %cst_73 [1] : vector<16x32xf32> to vector<16xf32>
    %211 = vector.shape_cast %210 : vector<16xf32> to vector<16x1xf32>
    %cst_74 = arith.constant 3.200000e+01 : f32
    %212 = vector.broadcast %cst_74 : f32 to vector<16x1xf32>
    %213 = arith.divf %211, %212 : vector<16x1xf32>
    %214 = vector.broadcast %213 : vector<16x1xf32> to vector<16x32xf32>
    %215 = arith.subf %209, %214 : vector<16x32xf32>
    %216 = arith.mulf %215, %215 : vector<16x32xf32>
    %cst_75 = arith.constant dense<0.000000e+00> : vector<16xf32>
    %217 = vector.multi_reduction <add>, %216, %cst_75 [1] : vector<16x32xf32> to vector<16xf32>
    %218 = vector.shape_cast %217 : vector<16xf32> to vector<16x1xf32>
    %cst_76 = arith.constant 3.200000e+01 : f32
    %219 = vector.broadcast %cst_76 : f32 to vector<16x1xf32>
    %220 = arith.divf %218, %219 : vector<16x1xf32>
    %cst_77 = arith.constant 9.99999997E-7 : f32
    %221 = vector.broadcast %cst_77 : f32 to vector<16x1xf32>
    %222 = arith.addf %220, %221 : vector<16x1xf32>
    %223 = math.rsqrt %222 : vector<16x1xf32>
    %224 = vector.broadcast %223 : vector<16x1xf32> to vector<16x32xf32>
    %225 = arith.mulf %215, %224 : vector<16x32xf32>
    %226 = vector.broadcast %193 : vector<1x32xf32> to vector<16x32xf32>
    %227 = arith.mulf %225, %226 : vector<16x32xf32>
    %228 = vector.broadcast %194 : vector<1x32xf32> to vector<16x32xf32>
    %229 = arith.addf %227, %228 : vector<16x32xf32>
    %cst_78 = arith.constant 0.000000e+00 : f32
    %230 = vector.broadcast %cst_78 : f32 to vector<16x32xf32>
    %231 = arith.maximumf %229, %230 : vector<16x32xf32>
    %232 = vector.extract_strided_slice %231 {offsets = [0, 0], sizes = [8, 32], strides = [1, 1]} : vector<16x32xf32> to vector<8x32xf32>
    %233 = vector.extract_strided_slice %231 {offsets = [8, 0], sizes = [8, 32], strides = [1, 1]} : vector<16x32xf32> to vector<8x32xf32>
    %234 = tpu.concatenate %232, %233 in 1 : vector<8x32xf32>, vector<8x32xf32> -> vector<8x64xf32>
    %cst_79 = arith.constant dense<0.000000e+00> : vector<8x64xf32>
    %235 = tpu.matmul %0, %234, %cst_79 {dimension_numbers = #tpu.dot_dimension_numbers<[1], [0], [0], [1], [0, 0, 1, 1], [], []>} : vector<8x8xf32>, vector<8x64xf32>, vector<8x64xf32> -> vector<8x64xf32>
    %236 = vector.extract_strided_slice %234 {offsets = [0, 0], sizes = [8, 32], strides = [1, 1]} : vector<8x64xf32> to vector<8x32xf32>
    %237 = vector.extract_strided_slice %234 {offsets = [0, 32], sizes = [8, 32], strides = [1, 1]} : vector<8x64xf32> to vector<8x32xf32>
    %238 = tpu.concatenate %236, %237 in 0 : vector<8x32xf32>, vector<8x32xf32> -> vector<16x32xf32>
    %239 = vector.extract_strided_slice %235 {offsets = [0, 0], sizes = [8, 32], strides = [1, 1]} : vector<8x64xf32> to vector<8x32xf32>
    %240 = vector.extract_strided_slice %235 {offsets = [0, 32], sizes = [8, 32], strides = [1, 1]} : vector<8x64xf32> to vector<8x32xf32>
    %241 = tpu.concatenate %239, %240 in 0 : vector<8x32xf32>, vector<8x32xf32> -> vector<16x32xf32>
    %242 = tpu.concatenate %238, %241 in 1 : vector<16x32xf32>, vector<16x32xf32> -> vector<16x64xf32>
    %cst_80 = arith.constant dense<0.000000e+00> : vector<16x32xf32>
    %243 = tpu.matmul %242, %188, %cst_80 {dimension_numbers = #tpu.dot_dimension_numbers<[1], [0], [0], [1], [0, 0, 1, 1], [], []>} : vector<16x64xf32>, vector<64x32xf32>, vector<16x32xf32> -> vector<16x32xf32>
    %244 = vector.broadcast %195 : vector<1x32xf32> to vector<16x32xf32>
    %245 = arith.addf %243, %244 : vector<16x32xf32>
    %cst_81 = arith.constant dense<0.000000e+00> : vector<16x32xf32>
    %246 = tpu.matmul %183, %189, %cst_81 {dimension_numbers = #tpu.dot_dimension_numbers<[1], [0], [0], [1], [0, 0, 1, 1], [], []>} : vector<16x32xf32>, vector<32x32xf32>, vector<16x32xf32> -> vector<16x32xf32>
    %247 = vector.broadcast %196 : vector<1x32xf32> to vector<16x32xf32>
    %248 = arith.addf %246, %247 : vector<16x32xf32>
    %249 = arith.addf %245, %248 : vector<16x32xf32>
    %cst_82 = arith.constant dense<0.000000e+00> : vector<16xf32>
    %250 = vector.multi_reduction <add>, %249, %cst_82 [1] : vector<16x32xf32> to vector<16xf32>
    %251 = vector.shape_cast %250 : vector<16xf32> to vector<16x1xf32>
    %cst_83 = arith.constant 3.200000e+01 : f32
    %252 = vector.broadcast %cst_83 : f32 to vector<16x1xf32>
    %253 = arith.divf %251, %252 : vector<16x1xf32>
    %254 = vector.broadcast %253 : vector<16x1xf32> to vector<16x32xf32>
    %255 = arith.subf %249, %254 : vector<16x32xf32>
    %256 = arith.mulf %255, %255 : vector<16x32xf32>
    %cst_84 = arith.constant dense<0.000000e+00> : vector<16xf32>
    %257 = vector.multi_reduction <add>, %256, %cst_84 [1] : vector<16x32xf32> to vector<16xf32>
    %258 = vector.shape_cast %257 : vector<16xf32> to vector<16x1xf32>
    %cst_85 = arith.constant 3.200000e+01 : f32
    %259 = vector.broadcast %cst_85 : f32 to vector<16x1xf32>
    %260 = arith.divf %258, %259 : vector<16x1xf32>
    %cst_86 = arith.constant 9.99999997E-7 : f32
    %261 = vector.broadcast %cst_86 : f32 to vector<16x1xf32>
    %262 = arith.addf %260, %261 : vector<16x1xf32>
    %263 = math.rsqrt %262 : vector<16x1xf32>
    %264 = vector.broadcast %263 : vector<16x1xf32> to vector<16x32xf32>
    %265 = arith.mulf %255, %264 : vector<16x32xf32>
    %266 = vector.broadcast %197 : vector<1x32xf32> to vector<16x32xf32>
    %267 = arith.mulf %265, %266 : vector<16x32xf32>
    %268 = vector.broadcast %198 : vector<1x32xf32> to vector<16x32xf32>
    %269 = arith.addf %267, %268 : vector<16x32xf32>
    %270 = vector.extract_strided_slice %269 {offsets = [0, 0], sizes = [8, 32], strides = [1, 1]} : vector<16x32xf32> to vector<8x32xf32>
    %c0_87 = arith.constant 0 : index
    %c0_88 = arith.constant 0 : index
    %c0_89 = arith.constant 0 : index
    %271 = vector.load %arg13[%c0_87, %c0_88, %c0_89] : memref<2x8x32xf32, #tpu.memory_space<vmem>>, vector<1x8x32xf32>
    %272 = vector.shape_cast %271 : vector<1x8x32xf32> to vector<8x32xf32>
    %273 = vector.shape_cast %270 : vector<8x32xf32> to vector<1x8x32xf32>
    tpu.vector_store %arg13[%c0_87, %c0_88, %c0_89], %273 {strides = array<i32>} : memref<2x8x32xf32, #tpu.memory_space<vmem>>, vector<1x8x32xf32>,
    %274 = vector.extract_strided_slice %269 {offsets = [8, 0], sizes = [8, 32], strides = [1, 1]} : vector<16x32xf32> to vector<8x32xf32>
    %c1_90 = arith.constant 1 : index
    %c0_91 = arith.constant 0 : index
    %c0_92 = arith.constant 0 : index
    %275 = vector.load %arg13[%c1_90, %c0_91, %c0_92] : memref<2x8x32xf32, #tpu.memory_space<vmem>>, vector<1x8x32xf32>
    %276 = vector.shape_cast %275 : vector<1x8x32xf32> to vector<8x32xf32>
    %277 = vector.shape_cast %274 : vector<8x32xf32> to vector<1x8x32xf32>
    tpu.vector_store %arg13[%c1_90, %c0_91, %c0_92], %277 {strides = array<i32>} : memref<2x8x32xf32, #tpu.memory_space<vmem>>, vector<1x8x32xf32>,
    return
  }
  func.func @transform_0(%arg0: i32) -> (i32, i32, i32) {
    %c0_i32 = arith.constant 0 : i32
    %c0_i32_0 = arith.constant 0 : i32
    %c0_i32_1 = arith.constant 0 : i32
    %c0_i32_2 = arith.constant 0 : i32
    return %c0_i32, %c0_i32_0, %c0_i32_1 : i32, i32, i32
  }
  func.func @transform_1(%arg0: i32) -> (i32, i32) {
    %c0_i32 = arith.constant 0 : i32
    %c0_i32_0 = arith.constant 0 : i32
    %c0_i32_1 = arith.constant 0 : i32
    return %c0_i32, %c0_i32_0 : i32, i32
  }
  func.func @transform_2(%arg0: i32) -> (i32, i32, i32) {
    %c0_i32 = arith.constant 0 : i32
    %c0_i32_0 = arith.constant 0 : i32
    %c0_i32_1 = arith.constant 0 : i32
    %c0_i32_2 = arith.constant 0 : i32
    return %c0_i32, %c0_i32_0, %c0_i32_1 : i32, i32, i32
  }
  func.func @transform_3(%arg0: i32) -> (i32, i32) {
    %c0_i32 = arith.constant 0 : i32
    %c0_i32_0 = arith.constant 0 : i32
    %c0_i32_1 = arith.constant 0 : i32
    return %c0_i32, %c0_i32_0 : i32, i32
  }
  func.func @transform_4(%arg0: i32) -> (i32, i32) {
    %c0_i32 = arith.constant 0 : i32
    %c0_i32_0 = arith.constant 0 : i32
    %c0_i32_1 = arith.constant 0 : i32
    return %c0_i32, %c0_i32_0 : i32, i32
  }
  func.func @transform_5(%arg0: i32) -> (i32, i32) {
    %c0_i32 = arith.constant 0 : i32
    %c0_i32_0 = arith.constant 0 : i32
    %c0_i32_1 = arith.constant 0 : i32
    return %c0_i32, %c0_i32_0 : i32, i32
  }
  func.func @transform_6(%arg0: i32) -> (i32, i32) {
    %c0_i32 = arith.constant 0 : i32
    %c0_i32_0 = arith.constant 0 : i32
    %c0_i32_1 = arith.constant 0 : i32
    return %c0_i32, %c0_i32_0 : i32, i32
  }
  func.func @transform_7(%arg0: i32) -> (i32, i32) {
    %c0_i32 = arith.constant 0 : i32
    %c0_i32_0 = arith.constant 0 : i32
    %c0_i32_1 = arith.constant 0 : i32
    return %c0_i32, %c0_i32_0 : i32, i32
  }
  func.func @transform_8(%arg0: i32) -> (i32, i32) {
    %c0_i32 = arith.constant 0 : i32
    %c0_i32_0 = arith.constant 0 : i32
    %c0_i32_1 = arith.constant 0 : i32
    return %c0_i32, %c0_i32_0 : i32, i32
  }
  func.func @transform_9(%arg0: i32) -> (i32, i32) {
    %c0_i32 = arith.constant 0 : i32
    %c0_i32_0 = arith.constant 0 : i32
    %c0_i32_1 = arith.constant 0 : i32
    return %c0_i32, %c0_i32_0 : i32, i32
  }
  func.func @transform_10(%arg0: i32) -> (i32, i32) {
    %c0_i32 = arith.constant 0 : i32
    %c0_i32_0 = arith.constant 0 : i32
    %c0_i32_1 = arith.constant 0 : i32
    return %c0_i32, %c0_i32_0 : i32, i32
  }
  func.func @transform_11(%arg0: i32) -> (i32, i32) {
    %c0_i32 = arith.constant 0 : i32
    %c0_i32_0 = arith.constant 0 : i32
    %c0_i32_1 = arith.constant 0 : i32
    return %c0_i32, %c0_i32_0 : i32, i32
  }
  func.func @transform_12(%arg0: i32) -> (i32, i32, i32) {
    %c0_i32 = arith.constant 0 : i32
    %c0_i32_0 = arith.constant 0 : i32
    %c0_i32_1 = arith.constant 0 : i32
    %c0_i32_2 = arith.constant 0 : i32
    return %c0_i32, %c0_i32_0, %c0_i32_1 : i32, i32, i32
  }
}

</mosaic_0001>

<bundles_post_ra>
// kernel: graph_layer_forward.1
= control target key start
LH: loop header
LB: loop body
LE: loop exit
PB: predicated region body
PF: predicated region fallthrough
CT: control target
= control target key end

     0   :  { %17 = vsyncpa [#allocation3], 0  ;;  %s2724_s0 = inlined_call_operand.hbm [shape: f32[2,8,32], index: 0, kind: input, shape index: {}]   ;;  %s2725_s1 = inlined_call_operand.hbm [shape: f32[8,8], index: 1, kind: input, shape index: {}]   ;;  %s2726_s2 = inlined_call_operand.vmem [shape: f32[3,8,32], index: 2, kind: input, shape index: {}]   ;;  %s2727_s3 = inlined_call_operand.vmem [shape: f32[64,32], index: 3, kind: input, shape index: {}]   ;;  %s2728_s4 = inlined_call_operand.vmem [shape: f32[64,32], index: 4, kind: input, shape index: {}]   ;;  %s2729_s5 = inlined_call_operand.hbm [shape: f32[32,32], index: 5, kind: input, shape index: {}]   ;;  %s2730_s6 = inlined_call_operand.hbm [shape: f32[64,32], index: 6, kind: input, shape index: {}]   ;;  %s2731_s7 = inlined_call_operand.hbm [shape: f32[64,32], index: 7, kind: input, shape index: {}]   ;;  %s2732_s8 = inlined_call_operand.hbm [shape: f32[32,32], index: 8, kind: input, shape index: {}]   ;;  %s2733_s9 = inlined_call_operand.hbm [shape: f32[64,32], index: 9, kind: input, shape index: {}]   ;;  %s2734_s10 = inlined_call_operand.hbm [shape: f32[64,32], index: 10, kind: input, shape index: {}]   ;;  %s2735_s11 = inlined_call_operand.vmem [shape: f32[32,32], index: 11, kind: input, shape index: {}]   ;;  %s2736_s12 = inlined_call_operand.hbm [shape: f32[2,8,32], index: 12, kind: output, shape index: {}]  }
   0x1   :  { %18 = vsyncpa [#allocation6], 0 }
   0x2   :  { %19 = vsyncpa [#allocation9], 0 }
   0x3   :  { %20 = vsyncpa [#allocation12], 0 }
   0x4   :  { %21 = vsyncpa [#allocation15], 0 }
   0x5   :  { %22 = vsyncpa [#allocation4], 0  ;;  %s2319_s21 = smov [#allocation5]  }
   0x6   :  { %s41_s22 = sshll.u32 %s2319_s21, 4  ;;  %s42_s22 = int_to_ptr.vmem [resolvable:$true] %s41_s22 }
   0x7   :  { %s2135_s23 = scalar_lea.vmem %s42_s22, 128  ;;  %p2140_p1 = scmp.lt.s32.totalorder %s42_s22, %s42_s22 }
   0x8   :  { %p2136_p0 = scmp.ne.s32.totalorder %s42_s22, %s2135_s23  ;;  %p2141_p2 = scmp.lt.s32.totalorder %s2135_s23, %s2135_s23 }
   0xa   :  { %p2142_p3 = por %p2141_p2, %p2140_p1 }
   0xc   :  { %p2143_p4 = pnand %p2142_p3, %p2136_p0 }
   0xe   :  { %2146 = shalt.err (!%p2143_p4)
}
   0xf   :  { %44 = dma.hbm_to_vmem [thread:$0]  %s2725_s1, 128, %s42_s22, [#allocation6]  }
  0x10   :  { %s2320_s26 = smov [#allocation8]   ;;  %s2321_s28 = smov [#allocation11]  }
  0x11   :  { %s68_s27 = sshll.u32 %s2320_s26, 4  ;;  %s92_s29 = sshll.u32 %s2321_s28, 4  ;;  %s69_s27 = int_to_ptr.vmem [resolvable:$true] %s68_s27  ;;  %s93_s29 = int_to_ptr.vmem [resolvable:$true] %s92_s29 }
  0x12   :  { %s2155_s30 = scalar_lea.vmem %s69_s27, 1024  ;;  %p2160_p6 = scmp.lt.s32.totalorder %s69_s27, %s69_s27 }
  0x13   :  { %p2156_p5 = scmp.ne.s32.totalorder %s69_s27, %s2155_s30  ;;  %p2161_p7 = scmp.lt.s32.totalorder %s2155_s30, %s2155_s30 }
  0x15   :  { %p2162_p8 = por %p2161_p7, %p2160_p6 }
  0x17   :  { %p2163_p9 = pnand %p2162_p8, %p2156_p5 }
  0x19   :  { %2166 = shalt.err (!%p2163_p9)
}
  0x1a   :  { %s2322_s13 = smov 128   ;;  %s2323_s14 = smov 8  }
  0x1b   :  { %74 = dma.hbm_to_vmem [thread:$0]  %s2730_s6, 1024, %s69_s27, [#allocation9], %s2322_s13, %s2322_s13, %s2323_s14  }
  0x1c   :  { %s2175_s1 = scalar_lea.vmem %s93_s29, 512  ;;  %p2180_p11 = scmp.lt.s32.totalorder %s93_s29, %s93_s29 }
  0x1d   :  { %p2176_p10 = scmp.ne.s32.totalorder %s93_s29, %s2175_s1  ;;  %p2181_p12 = scmp.lt.s32.totalorder %s2175_s1, %s2175_s1 }
  0x1f   :  { %p2182_p13 = por %p2181_p12, %p2180_p11 }
  0x21   :  { %p2183_p0 = pnand %p2182_p13, %p2176_p10 }
  0x23   :  { %2186 = shalt.err (!%p2183_p0)
}
  0x24   :  { %98 = dma.hbm_to_vmem [thread:$0]  %s2732_s8, 512, %s93_s29, [#allocation12], %s2322_s13, %s2322_s13, %s2323_s14  }
  0x25   :  { %s2324_s19 = smov [#allocation2]   ;;  %s2325_s21 = smov [#allocation7]  }
  0x26   :  { %s28_s20 = sshll.u32 %s2324_s19, 4  ;;  %s56_s6 = sshll.u32 %s2325_s21, 4  ;;  %s29_s20 = int_to_ptr.vmem [resolvable:$true] %s28_s20  ;;  %s57_s6 = int_to_ptr.vmem [resolvable:$true] %s56_s6 }
  0x27   :  { %s2195_s22 = scalar_lea.vmem %s29_s20, 256  ;;  %p2200_p2 = scmp.lt.s32.totalorder %s29_s20, %s29_s20 }
  0x28   :  { %p2196_p1 = scmp.ne.s32.totalorder %s29_s20, %s2195_s22  ;;  %p2201_p3 = scmp.lt.s32.totalorder %s2195_s22, %s2195_s22 }
  0x2a   :  { %p2202_p4 = por %p2201_p3, %p2200_p2 }
  0x2c   :  { %p2203_p5 = pnand %p2202_p4, %p2196_p1 }
  0x2e   :  { %2206 = shalt.err (!%p2203_p5)
}
  0x2f   :  { %34 = dma.hbm_to_vmem [thread:$0]  %s2724_s0, 256, %s29_s20, [#allocation3], %s2322_s13, %s2322_s13, %s2323_s14  }
  0x30   :  { %s2215_s8 = scalar_lea.vmem %s57_s6, 512  ;;  %p2220_p7 = scmp.lt.s32.totalorder %s57_s6, %s57_s6 }
  0x31   :  { %p2216_p6 = scmp.ne.s32.totalorder %s57_s6, %s2215_s8  ;;  %p2221_p8 = scmp.lt.s32.totalorder %s2215_s8, %s2215_s8 }
  0x33   :  { %p2222_p9 = por %p2221_p8, %p2220_p7 }
  0x35   :  { %p2223_p10 = pnand %p2222_p9, %p2216_p6 }
  0x37   :  { %2226 = shalt.err (!%p2223_p10)
}
  0x38   :  { %62 = dma.hbm_to_vmem [thread:$0]  %s2729_s5, 512, %s57_s6, [#allocation6], %s2322_s13, %s2322_s13, %s2323_s14  }
  0x39   :  { %s2326_s27 = smov [#allocation10]   ;;  %s2327_s29 = smov [#allocation13]  }
  0x3a   :  { %s80_s28 = sshll.u32 %s2326_s27, 4  ;;  %s104_s0 = sshll.u32 %s2327_s29, 4  ;;  %s81_s28 = int_to_ptr.vmem [resolvable:$true] %s80_s28  ;;  %s105_s0 = int_to_ptr.vmem [resolvable:$true] %s104_s0 }
  0x3b   :  { %s2235_s30 = scalar_lea.vmem %s81_s28, 1024  ;;  %p2240_p12 = scmp.lt.s32.totalorder %s81_s28, %s81_s28 }
  0x3c   :  { %p2236_p11 = scmp.ne.s32.totalorder %s81_s28, %s2235_s30  ;;  %p2241_p13 = scmp.lt.s32.totalorder %s2235_s30, %s2235_s30 }
  0x3e   :  { %p2242_p0 = por %p2241_p13, %p2240_p12 }
  0x40   :  { %p2243_p1 = pnand %p2242_p0, %p2236_p11 }
  0x42   :  { %2246 = shalt.err (!%p2243_p1)
}
  0x43   :  { %86 = dma.hbm_to_vmem [thread:$0]  %s2731_s7, 1024, %s81_s28, [#allocation9], %s2322_s13, %s2322_s13, %s2323_s14  }
  0x44   :  { %s2255_s5 = scalar_lea.vmem %s105_s0, 1024  ;;  %p2260_p3 = scmp.lt.s32.totalorder %s105_s0, %s105_s0 }
  0x45   :  { %p2256_p2 = scmp.ne.s32.totalorder %s105_s0, %s2255_s5  ;;  %p2261_p4 = scmp.lt.s32.totalorder %s2255_s5, %s2255_s5 }
  0x47   :  { %p2262_p5 = por %p2261_p4, %p2260_p3 }
  0x49   :  { %p2263_p6 = pnand %p2262_p5, %p2256_p2 }
  0x4b   :  { %2266 = shalt.err (!%p2263_p6)
}
  0x4c   :  { %110 = dma.hbm_to_vmem [thread:$0]  %s2733_s9, 1024, %s105_s0, [#allocation12], %s2322_s13, %s2322_s13, %s2323_s14  }
  0x4d   :  { %s2328_s18 = smov [#allocation14]  }
  0x4e   :  { %s116_s19 = sshll.u32 %s2328_s18, 4  ;;  %s117_s19 = int_to_ptr.vmem [resolvable:$true] %s116_s19 }
  0x4f   :  { %s2275_s20 = scalar_lea.vmem %s117_s19, 1024  ;;  %p2280_p8 = scmp.lt.s32.totalorder %s117_s19, %s117_s19 }
  0x50   :  { %p2276_p7 = scmp.ne.s32.totalorder %s117_s19, %s2275_s20  ;;  %p2281_p9 = scmp.lt.s32.totalorder %s2275_s20, %s2275_s20 }
  0x52   :  { %p2282_p10 = por %p2281_p9, %p2280_p8 }
  0x54   :  { %p2283_p11 = pnand %p2282_p10, %p2276_p7 }
  0x56   :  { %2286 = shalt.err (!%p2283_p11)
}
  0x57   :  { %122 = dma.hbm_to_vmem [thread:$0]  %s2734_s10, 1024, %s117_s19, [#allocation15], %s2322_s13, %s2322_s13, %s2323_s14  }
  0x58   :  { %2307 = dma.done.wait [#allocation3], 256  }
  0x59   :  { %2308 = vsyncadd [#allocation3], 4294967040 }
  0x5a   :  { %2309 = dma.done.wait [#allocation6], 640  }
  0x5b   :  { %2310 = vsyncadd [#allocation6], 4294966656 }
  0x5c   :  { %2311 = dma.done.wait [#allocation9], 2048  }
  0x5d   :  { %2312 = vsyncadd [#allocation9], 4294965248 }
  0x5e   :  { %2313 = dma.done.wait [#allocation12], 1536  }
  0x5f   :  { %2314 = vsyncadd [#allocation12], 4294965760 }
  0x60   :  { %2315 = dma.done.wait [#allocation15], 1024  }
  0x61   :  { %2316 = vsyncadd [#allocation15], 4294966272  ;;  %v2329_v0 = vmov 0.0   ;;  %vm2330_vm0 = vmmov 0   ;;  %v2447_v1 = vld [vmem:[#allocation2 + $0x8] sm:$0xff]  ;;  %s2331_s9 = smov 32   ;;  %v269_v22 = vlaneseq }
  0x62   :  { %1911 = vmatprep.subr.mxu0 %v2329_v0  ;;  %1913 = vmatprep.mubr.msk.f32.mxu0 %vm2330_vm0, %v2329_v0  ;;  %v150_v2 = vld [vmem:[#allocation2] sm:$0xff]  ;;  %vm157_vm1 = vcmask 261120   ;;  %v2451_v4 = vld [vmem:[#allocation5] sm:$0xff]  ;;  %vm180_vm2 = vcmask 64512   ;;  %v166_v6 = vld [vmem:[%s2727_s3 + $0x38] sm:$0xff]  ;;  %s2332_s30 = smov 96  }
  0x63   :  { %154 = vrot.lane.b32.xlu0 %v2447_v1, %s2331_s9  ;;  %v165_v7 = vld [vmem:[%s2727_s3 + $0x30] sm:$0xff]  ;;  %1916 = vmatprep.subr.mxu1 %v166_v6  ;;  %v164_v8 = vld [vmem:[%s2727_s3 + $0x28] sm:$0xff]  ;;  %v163_v9 = vld [vmem:[%s2727_s3 + $0x20] sm:$0xff]  ;;  %vm273_vm3 = vcmask 523264   ;;  %v2492_v23 = vshrl.u32 %v269_v22, 7 }
  0x64   :  { %1917 = vmatpush3.msra.mxu1 %v166_v6  ;;  %v162_v10 = vld [vmem:[%s2727_s3 + $0x18] sm:$0xff]  ;;  %v161_v12 = vld [vmem:[%s2727_s3 + $0x10] sm:$0xff]  ;;  %v160_v14 = vld [vmem:[%s2727_s3 + $0x8] sm:$0xff] }
  0x65   :  { %1918 = vmatprep.subr.mxu1 %v165_v7  ;;  %v159_v15 = vld [vmem:[%s2727_s3] sm:$0xff]  ;;  %v2495_v24 = vsub.s32 0, %v2492_v23  ;;  %v2509_v49 = vsub.s32 1, %v2492_v23  ;;  %v2512_v50 = vsub.s32 2, %v2492_v23  ;;  %v178_v6 = vld [vmem:[#allocation7 + $0x18] sm:$0xff] }
  0x66   :  { %1919 = vmatpush3.msra.mxu1 %v165_v7  ;;  %v2500_v25 = vld [vmem:[%s2726_s2] sm:$0xff]  ;;  %v172_v7 = vld [vmem:[%s2728_s4 + $0x28] sm:$0xff] }
  0x67   :  { %1920 = vmatprep.subr.mxu1 %v164_v8  ;;  %v272_v26 = vrot.slane %v2500_v25, %v2495_v24  ;;  %v385_v51 = vrot.slane %v2500_v25, %v2509_v49  ;;  %v391_v54 = vrot.slane %v2500_v25, %v2512_v50 }
  0x68   :  { %1921 = vmatpush3.msra.mxu1 %v164_v8  ;;  %v177_v8 = vld [vmem:[#allocation7 + $0x10] sm:$0xff] }
  0x69   :  { %1922 = vmatprep.subr.mxu1 %v163_v9 }
  0x6a   :  { %1923 = vmatpush3.msra.mxu1 %v163_v9  ;;  %v176_v9 = vld [vmem:[#allocation7 + $0x8] sm:$0xff] }
  0x6b   :  { %1924 = vmatprep.subr.mxu1 %v162_v10 }
  0x6c   :  { %1925 = vmatpush3.msra.mxu1 %v162_v10  ;;  %v171_v10 = vld [vmem:[%s2728_s4 + $0x20] sm:$0xff] }
  0x6d   :  { %1926 = vmatprep.subr.mxu1 %v161_v12 }
  0x6e   :  { %1927 = vmatpush3.msra.mxu1 %v161_v12  ;;  %v175_v12 = vld [vmem:[#allocation7] sm:$0xff] }
  0x6f   :  { %1928 = vmatprep.subr.mxu1 %v160_v14 }
  0x70   :  { %1929 = vmatpush3.msra.mxu1 %v160_v14  ;;  %v169_v14 = vld [vmem:[%s2728_s4 + $0x10] sm:$0xff] }
  0x71   :  { %1930 = vmatprep.subr.mxu1 %v159_v15 }
  0x72   :  { %1931 = vmatpush3.msra.mxu1 %v159_v15 }
  0x73   :  { %1959 = vmatprep.subr.mxu1 %v178_v6 }
  0xd5   :  { %v155_v3 = vpop.permute.xlu0 %154 }
  0xd6   :  { %v158_v5 = vsel %vm157_vm1, %v150_v2, %v155_v3  ;;  %v174_v3 = vld [vmem:[%s2728_s4 + $0x38] sm:$0xff] }
  0xd7   :  { %1912 = vmatpush3.msra.mxu0 %v158_v5 }
  0xd8   :  { %1914 = vmatmul.mubr.msk.f32.vlgmr.msra.gmra.mxu0 %vm180_vm2, %v2451_v4  ;;  %1935 = vmatprep.subr.mxu0 %v2329_v0 }
  0xd9   :  { %1937 = vmatprep.mubr.msk.f32.mxu0 %vm2330_vm0, %v2329_v0 }
 0x198   :  { %v250_v11 = vpop.f32.mrf.mxu0 }
 0x199   :  { %261 = vrot.lane.b32.xlu1 %v250_v11, %s2331_s9  ;;  %259 = vrot.lane.b32.xlu0 %v250_v11, %s2332_s30  ;;  %v170_v11 = vld [vmem:[%s2728_s4 + $0x18] sm:$0xff] }
 0x19a   :  { %v1915_v13 = vpop.f32.mrf.mxu0 }
 0x19d   :  { %255 = vrot.lane.b32.xlu1 %v158_v5, %s2332_s30 }
 0x20b   :  { %v262_v16 = vpop.permute.xlu1 %261  ;;  %v260_v17 = vpop.permute.xlu0 %259 }
 0x20c   :  { %263 = vrot.lane.b32.xlu0 %v260_v17, %s2331_s9  ;;  %v267_v18 = vsel %vm157_vm1, %v158_v5, %v262_v16  ;;  %v173_v5 = vld [vmem:[%s2728_s4 + $0x30] sm:$0xff]  ;;  %v168_v16 = vld [vmem:[%s2728_s4 + $0x8] sm:$0xff]  ;;  %v167_v17 = vld [vmem:[%s2728_s4] sm:$0xff] }
 0x20d   :  { %1932 = vmatprep.mubr.msk.f32.mxu1 %vm273_vm3, %v267_v18 }
 0x20f   :  { %v256_v19 = vpop.permute.xlu1 %255 }
 0x27e   :  { %v264_v20 = vpop.permute.xlu0 %263 }
 0x27f   :  { %v268_v21 = vsel %vm157_vm1, %v256_v19, %v264_v20 }
 0x280   :  { %1933 = vmatmul.mubr.msk.f32.vlgmr.msra.gmra.mxu1 %vm273_vm3, %v268_v21 }
 0x281   :  { %1967 = vmatprep.mubr.msk.f32.mxu1 %vm157_vm1, %v150_v2  ;;  %1960 = vmatpush3.msra.mxu1 %v178_v6 }
 0x282   :  { %1961 = vmatprep.subr.mxu1 %v177_v8 }
 0x283   :  { %1962 = vmatpush3.msra.mxu1 %v177_v8 }
 0x284   :  { %1963 = vmatprep.subr.mxu1 %v176_v9 }
 0x285   :  { %1964 = vmatpush3.msra.mxu1 %v176_v9 }
 0x286   :  { %1965 = vmatprep.subr.mxu1 %v175_v12 }
 0x287   :  { %1966 = vmatpush3.msra.mxu1 %v175_v12 }
 0x288   :  { %1968 = vmatmul.mubr.msk.f32.vlgmr.msra.gmra.mxu1 %vm157_vm1, %v2447_v1 }
 0x340   :  { %v1934_v27 = vpop.f32.mrf.mxu1 }
 0x341   :  { %v352_v28 = vadd.f32 %v1934_v27, %v272_v26  ;;  %v2563_v27 = vsub.s32 3, %v2492_v23 }
 0x342   :  { %v346_v29 = vpop.f32.mrf.mxu1 }
 0x343   :  { %v347_v30 = vadd.f32 %v346_v29, %v272_v26  ;;  %v358_v31 = vsel %vm157_vm1, %v352_v28, 0.0  ;;  %v2560_v26 = vsub.s32 4, %v2492_v23 }
 0x344   :  { %359 = vadd.xlane.f32.xlu1 %v358_v31 }
 0x345   :  { %v355_v32 = vsel %vm157_vm1, %v347_v30, 0.0 }
 0x346   :  { %356 = vadd.xlane.f32.xlu0 %v355_v32 }
 0x348   :  { %v1969_v29 = vpop.f32.mrf.mxu1 }
 0x3cd   :  { %v360_v33 = vpop.xlane.xlu1 %359 }
 0x3ce   :  { %v363_v34 = vmul.f32 0.03125, %v360_v33  ;;  %v646_v33 = vpop.f32.mrf.mxu1 }
 0x3cf   :  { %v357_v35 = vpop.xlane.xlu0 %356 }
 0x3d0   :  { %v365_v36 = vsub.f32 %v352_v28, %v363_v34  ;;  %v362_v37 = vmul.f32 0.03125, %v357_v35  ;;  %v574_v28 = vrot.slane %v2500_v25, %v2560_v26 }
 0x3d2   :  { %v364_v38 = vsub.f32 %v347_v30, %v362_v37  ;;  %v367_v39 = vmul.f32 %v365_v36, %v365_v36  ;;  %v489_v30 = vrot.slane %v2500_v25, %v2563_v27  ;;  %v652_v31 = vadd.f32 %v1969_v29, %v574_v28 }
 0x3d4   :  { %v371_v40 = vsel %vm157_vm1, %v367_v39, 0.0  ;;  %v366_v41 = vmul.f32 %v364_v38, %v364_v38 }
 0x3d5   :  { %372 = vadd.xlane.f32.xlu0 %v371_v40 }
 0x3d6   :  { %v368_v42 = vsel %vm157_vm1, %v366_v41, 0.0 }
 0x3d7   :  { %369 = vadd.xlane.f32.xlu1 %v368_v42 }
 0x45e   :  { %v373_v43 = vpop.xlane.xlu0 %372 }
 0x45f   :  { %v375_v44 = vmul.f32 0.03125, %v373_v43 }
 0x460   :  { %v370_v45 = vpop.xlane.xlu1 %369 }
 0x461   :  { %v377_v46 = vadd.f32 1e-06, %v375_v44  ;;  %v374_v47 = vmul.f32 0.03125, %v370_v45 }
 0x463   :  { %2103 = vrsqrt.f32 %v377_v46  ;;  %v376_v48 = vadd.f32 1e-06, %v374_v47 }
 0x465   :  { %2105 = vrsqrt.f32 %v376_v48 }
 0x470   :  { %v2104_v52 = vpop.eup %2103 }
 0x471   :  { %v381_v53 = vmul.f32 %v2104_v52, %v365_v36  ;;  %v647_v36 = vadd.f32 %v646_v33, %v574_v28 }
 0x472   :  { %v2106_v55 = vpop.eup %2105 }
 0x473   :  { %v387_v56 = vmul.f32 %v385_v51, %v381_v53  ;;  %v380_v57 = vmul.f32 %v2106_v55, %v364_v38 }
 0x475   :  { %v393_v58 = vadd.f32 %v391_v54, %v387_v56  ;;  %v386_v59 = vmul.f32 %v385_v51, %v380_v57 }
 0x477   :  { %v395_v60 = vmax.f32 %v393_v58, 0.0  ;;  %v392_v61 = vadd.f32 %v391_v54, %v386_v59 }
 0x479   :  { %397 = vrot.lane.b32.xlu0 %v395_v60, %s2331_s9  ;;  %v394_v62 = vmax.f32 %v392_v61, 0.0  ;;  %v2574_v60 = vsub.s32 5, %v2492_v23  ;;  %v2577_v61 = vsub.s32 6, %v2492_v23 }
 0x4eb   :  { %v398_v63 = vpop.permute.xlu0 %397 }
 0x4ec   :  { %v400_v2 = vsel %vm157_vm1, %v394_v62, %v398_v63  ;;  %v686_v62 = vrot.slane %v2500_v25, %v2574_v60 }
 0x4ed   :  { %472 = vrot.lane.b32.xlu0 %v400_v2, %s2332_s30  ;;  %1936 = vmatpush3.msra.mxu0 %v400_v2 }
 0x4ee   :  { %1938 = vmatmul.mubr.msk.f32.vlgmr.msra.gmra.mxu0 %vm180_vm2, %v2451_v4  ;;  %1940 = vmatprep.subr.mxu0 %v174_v3 }
 0x4ef   :  { %1941 = vmatpush3.msra.mxu0 %v174_v3  ;;  %v692_v3 = vrot.slane %v2500_v25, %v2577_v61  ;;  %v709_v25 = vld [vmem:[#allocation8 + $0x38] sm:$0xff] }
 0x4f0   :  { %1942 = vmatprep.subr.mxu0 %v173_v5  ;;  %1975 = vmatprep.subr.mxu1 %v709_v25 }
 0x4f1   :  { %1943 = vmatpush3.msra.mxu0 %v173_v5  ;;  %1976 = vmatpush3.msra.mxu1 %v709_v25 }
 0x4f2   :  { %1944 = vmatprep.subr.mxu0 %v172_v7 }
 0x4f3   :  { %1945 = vmatpush3.msra.mxu0 %v172_v7 }
 0x4f4   :  { %1946 = vmatprep.subr.mxu0 %v171_v10 }
 0x4f5   :  { %1947 = vmatpush3.msra.mxu0 %v171_v10 }
 0x4f6   :  { %1948 = vmatprep.subr.mxu0 %v170_v11 }
 0x4f7   :  { %1949 = vmatpush3.msra.mxu0 %v170_v11 }
 0x4f8   :  { %1950 = vmatprep.subr.mxu0 %v169_v14 }
 0x4f9   :  { %1951 = vmatpush3.msra.mxu0 %v169_v14  ;;  %v708_v14 = vld [vmem:[#allocation8 + $0x30] sm:$0xff] }
 0x4fa   :  { %1952 = vmatprep.subr.mxu0 %v168_v16  ;;  %1977 = vmatprep.subr.mxu1 %v708_v14 }
 0x4fb   :  { %1953 = vmatpush3.msra.mxu0 %v168_v16  ;;  %1978 = vmatpush3.msra.mxu1 %v708_v14  ;;  %v706_v16 = vld [vmem:[#allocation8 + $0x20] sm:$0xff] }
 0x4fc   :  { %1954 = vmatprep.subr.mxu0 %v167_v17 }
 0x4fd   :  { %1955 = vmatpush3.msra.mxu0 %v167_v17  ;;  %v705_v17 = vld [vmem:[#allocation8 + $0x18] sm:$0xff] }
 0x4fe   :  { %1970 = vmatprep.subr.mxu0 %v2329_v0 }
 0x55f   :  { %v473_v1 = vpop.permute.xlu0 %472 }
 0x5ae   :  { %v467_v13 = vpop.f32.mrf.mxu0 }
 0x5af   :  { %476 = vrot.lane.b32.xlu1 %v467_v13, %s2332_s30 }
 0x5b0   :  { %v1939_v15 = vpop.f32.mrf.mxu0 }
 0x5b1   :  { %v707_v15 = vld [vmem:[#allocation8 + $0x28] sm:$0xff] }
 0x5b2   :  { %1979 = vmatprep.subr.mxu1 %v707_v15 }
 0x5b3   :  { %478 = vrot.lane.b32.xlu1 %v467_v13, %s2331_s9  ;;  %1980 = vmatpush3.msra.mxu1 %v707_v15 }
 0x5b4   :  { %1981 = vmatprep.subr.mxu1 %v706_v16 }
 0x5b5   :  { %1982 = vmatpush3.msra.mxu1 %v706_v16  ;;  %v717_v16 = vld [vmem:[#allocation10 + $0x38] sm:$0xff] }
 0x5b6   :  { %1983 = vmatprep.subr.mxu1 %v705_v17 }
 0x5b7   :  { %1984 = vmatpush3.msra.mxu1 %v705_v17  ;;  %v716_v17 = vld [vmem:[#allocation10 + $0x30] sm:$0xff] }
 0x621   :  { %v477_v18 = vpop.permute.xlu1 %476 }
 0x622   :  { %480 = vrot.lane.b32.xlu1 %v477_v18, %s2331_s9 }
 0x625   :  { %v479_v19 = vpop.permute.xlu1 %478 }
 0x626   :  { %v484_v20 = vsel %vm157_vm1, %v400_v2, %v479_v19  ;;  %v704_v19 = vld [vmem:[#allocation8 + $0x10] sm:$0xff] }
 0x627   :  { %1956 = vmatprep.mubr.msk.f32.mxu0 %vm273_vm3, %v484_v20  ;;  %1985 = vmatprep.subr.mxu1 %v704_v19 }
 0x628   :  { %1986 = vmatpush3.msra.mxu1 %v704_v19  ;;  %v714_v19 = vld [vmem:[#allocation10 + $0x20] sm:$0xff] }
 0x694   :  { %v481_v21 = vpop.permute.xlu1 %480 }
 0x695   :  { %v485_v22 = vsel %vm157_vm1, %v473_v1, %v481_v21  ;;  %v703_v1 = vld [vmem:[#allocation8 + $0x8] sm:$0xff]  ;;  %v702_v21 = vld [vmem:[#allocation8] sm:$0xff] }
 0x696   :  { %1957 = vmatmul.mubr.msk.f32.vlgmr.msra.gmra.mxu0 %vm273_vm3, %v485_v22  ;;  %1987 = vmatprep.subr.mxu1 %v703_v1  ;;  %v721_v22 = vld [vmem:[#allocation11 + $0x18] sm:$0xff] }
 0x697   :  { %1972 = vmatprep.mubr.msk.f32.mxu0 %vm2330_vm0, %v2329_v0  ;;  %1988 = vmatpush3.msra.mxu1 %v703_v1 }
 0x698   :  { %1989 = vmatprep.subr.mxu1 %v702_v21 }
 0x699   :  { %1990 = vmatpush3.msra.mxu1 %v702_v21  ;;  %v712_v21 = vld [vmem:[#allocation10 + $0x10] sm:$0xff] }
 0x69a   :  { %2018 = vmatprep.subr.mxu1 %v721_v22 }
 0x756   :  { %v1958_v32 = vpop.f32.mrf.mxu0 }
 0x757   :  { %v568_v34 = vadd.f32 %v1958_v32, %v489_v30 }
 0x758   :  { %v562_v35 = vpop.f32.mrf.mxu0 }
 0x759   :  { %v563_v37 = vadd.f32 %v562_v35, %v489_v30  ;;  %v656_v38 = vadd.f32 %v652_v31, %v568_v34  ;;  %v720_v34 = vld [vmem:[#allocation11 + $0x10] sm:$0xff]  ;;  %v719_v35 = vld [vmem:[#allocation11 + $0x8] sm:$0xff] }
 0x75b   :  { %v660_v39 = vsel %vm157_vm1, %v656_v38, 0.0  ;;  %v655_v40 = vadd.f32 %v647_v36, %v563_v37  ;;  %v718_v36 = vld [vmem:[#allocation11] sm:$0xff]  ;;  %v2606_v37 = vld [vmem:[%s2726_s2 + $0x8] sm:$0xff] }
 0x75c   :  { %661 = vadd.xlane.f32.xlu0 %v660_v39 }
 0x75d   :  { %v657_v41 = vsel %vm157_vm1, %v655_v40, 0.0 }
 0x75e   :  { %658 = vadd.xlane.f32.xlu1 %v657_v41 }
 0x7e5   :  { %v662_v42 = vpop.xlane.xlu0 %661 }
 0x7e6   :  { %v664_v43 = vmul.f32 0.03125, %v662_v42 }
 0x7e7   :  { %v659_v44 = vpop.xlane.xlu1 %658 }
 0x7e8   :  { %v666_v45 = vsub.f32 %v656_v38, %v664_v43  ;;  %v663_v46 = vmul.f32 0.03125, %v659_v44  ;;  %v812_v38 = vrot.slane %v2606_v37, %v2495_v24 }
 0x7ea   :  { %v665_v47 = vsub.f32 %v655_v40, %v663_v46  ;;  %v668_v48 = vmul.f32 %v666_v45, %v666_v45 }
 0x7ec   :  { %v672_v51 = vsel %vm157_vm1, %v668_v48, 0.0  ;;  %v667_v52 = vmul.f32 %v665_v47, %v665_v47 }
 0x7ed   :  { %673 = vadd.xlane.f32.xlu0 %v672_v51 }
 0x7ee   :  { %v669_v53 = vsel %vm157_vm1, %v667_v52, 0.0 }
 0x7f1   :  { %670 = vadd.xlane.f32.xlu0 %v669_v53 }
 0x876   :  { %v674_v54 = vpop.xlane.xlu0 %673 }
 0x877   :  { %v676_v55 = vmul.f32 0.03125, %v674_v54 }
 0x879   :  { %v678_v56 = vadd.f32 1e-06, %v676_v55 }
 0x87a   :  { %v671_v57 = vpop.xlane.xlu0 %670 }
 0x87b   :  { %2107 = vrsqrt.f32 %v678_v56  ;;  %v675_v58 = vmul.f32 0.03125, %v671_v57 }
 0x87d   :  { %v677_v59 = vadd.f32 1e-06, %v675_v58 }
 0x87f   :  { %2109 = vrsqrt.f32 %v677_v59 }
 0x888   :  { %v2108_v63 = vpop.eup %2107 }
 0x889   :  { %v682_v2 = vmul.f32 %v2108_v63, %v666_v45 }
 0x88b   :  { %v688_v5 = vmul.f32 %v686_v62, %v682_v2 }
 0x88c   :  { %v2110_v6 = vpop.eup %2109 }
 0x88d   :  { %v2583_v7 = vadd.f32 %v692_v3, %v688_v5  ;;  %v681_v8 = vmul.f32 %v2110_v6, %v665_v47 }
 0x88f   :  { %v696_v9 = vmax.f32 %v2583_v7, 0.0  ;;  %v687_v10 = vmul.f32 %v686_v62, %v681_v8  ;;  %v929_v7 = vrot.slane %v2606_v37, %v2512_v50 }
 0x891   :  { %698 = vrot.lane.b32.xlu1 %v696_v9, %s2331_s9  ;;  %v693_v23 = vadd.f32 %v692_v3, %v687_v10  ;;  %v923_v3 = vrot.slane %v2606_v37, %v2509_v49 }
 0x893   :  { %v695_v11 = vmax.f32 %v693_v23, 0.0 }
 0x903   :  { %v699_v12 = vpop.permute.xlu1 %698 }
 0x904   :  { %v701_v13 = vsel %vm157_vm1, %v695_v11, %v699_v12 }
 0x905   :  { %1971 = vmatpush3.msra.mxu0 %v701_v13 }
 0x906   :  { %1973 = vmatmul.mubr.msk.f32.vlgmr.msra.gmra.mxu0 %vm180_vm2, %v2451_v4  ;;  %1994 = vmatprep.subr.mxu0 %v2329_v0 }
 0x907   :  { %1996 = vmatprep.mubr.msk.f32.mxu0 %vm2330_vm0, %v2329_v0 }
 0x9c6   :  { %v790_v18 = vpop.f32.mrf.mxu0 }
 0x9c7   :  { %801 = vrot.lane.b32.xlu1 %v790_v18, %s2331_s9  ;;  %799 = vrot.lane.b32.xlu0 %v790_v18, %s2332_s30  ;;  %v715_v18 = vld [vmem:[#allocation10 + $0x28] sm:$0xff] }
 0x9c8   :  { %v1974_v20 = vpop.f32.mrf.mxu0 }
 0x9c9   :  { %v713_v20 = vld [vmem:[#allocation10 + $0x18] sm:$0xff] }
 0x9cb   :  { %795 = vrot.lane.b32.xlu1 %v701_v13, %s2332_s30 }
 0xa39   :  { %v802_v28 = vpop.permute.xlu1 %801  ;;  %v800_v29 = vpop.permute.xlu0 %799 }
 0xa3a   :  { %v807_v30 = vsel %vm157_vm1, %v701_v13, %v802_v28  ;;  %803 = vrot.lane.b32.xlu0 %v800_v29, %s2331_s9  ;;  %v711_v28 = vld [vmem:[#allocation10 + $0x8] sm:$0xff]  ;;  %v710_v29 = vld [vmem:[#allocation10] sm:$0xff] }
 0xa3b   :  { %1991 = vmatprep.mubr.msk.f32.mxu1 %vm273_vm3, %v807_v30 }
 0xa3d   :  { %v796_v31 = vpop.permute.xlu1 %795 }
 0xaac   :  { %v804_v32 = vpop.permute.xlu0 %803 }
 0xaad   :  { %v808_v33 = vsel %vm157_vm1, %v796_v31, %v804_v32 }
 0xaae   :  { %1992 = vmatmul.mubr.msk.f32.vlgmr.msra.gmra.mxu1 %vm273_vm3, %v808_v33 }
 0xaaf   :  { %2019 = vmatpush3.msra.mxu1 %v721_v22  ;;  %2026 = vmatprep.mubr.msk.f32.mxu1 %vm157_vm1, %v695_v11 }
 0xab0   :  { %2020 = vmatprep.subr.mxu1 %v720_v34 }
 0xab1   :  { %2021 = vmatpush3.msra.mxu1 %v720_v34 }
 0xab2   :  { %2022 = vmatprep.subr.mxu1 %v719_v35 }
 0xab3   :  { %2023 = vmatpush3.msra.mxu1 %v719_v35 }
 0xab4   :  { %2024 = vmatprep.subr.mxu1 %v718_v36 }
 0xab5   :  { %2025 = vmatpush3.msra.mxu1 %v718_v36 }
 0xab6   :  { %2027 = vmatmul.mubr.msk.f32.vlgmr.msra.gmra.mxu1 %vm157_vm1, %v696_v9 }
 0xb6e   :  { %v1993_v39 = vpop.f32.mrf.mxu1 }
 0xb6f   :  { %v891_v40 = vadd.f32 %v1993_v39, %v812_v38  ;;  %v1027_v39 = vrot.slane %v2606_v37, %v2563_v27 }
 0xb70   :  { %v885_v41 = vpop.f32.mrf.mxu1 }
 0xb71   :  { %v886_v42 = vadd.f32 %v885_v41, %v812_v38  ;;  %v897_v43 = vsel %vm157_vm1, %v891_v40, 0.0  ;;  %v1112_v38 = vrot.slane %v2606_v37, %v2560_v26 }
 0xb72   :  { %898 = vadd.xlane.f32.xlu1 %v897_v43 }
 0xb73   :  { %v894_v44 = vsel %vm157_vm1, %v886_v42, 0.0 }
 0xb74   :  { %895 = vadd.xlane.f32.xlu0 %v894_v44 }
 0xb76   :  { %v2028_v36 = vpop.f32.mrf.mxu1 }
 0xbfb   :  { %v899_v45 = vpop.xlane.xlu1 %898 }
 0xbfc   :  { %v901_v46 = vmul.f32 0.03125, %v899_v45 }
 0xbfd   :  { %v896_v47 = vpop.xlane.xlu0 %895 }
 0xbfe   :  { %v903_v48 = vsub.f32 %v891_v40, %v901_v46  ;;  %v900_v51 = vmul.f32 0.03125, %v896_v47  ;;  %v1184_v40 = vpop.f32.mrf.mxu1 }
 0xbff   :  { %v1185_v45 = vadd.f32 %v1184_v40, %v1112_v38 }
 0xc00   :  { %v902_v52 = vsub.f32 %v886_v42, %v900_v51  ;;  %v905_v53 = vmul.f32 %v903_v48, %v903_v48  ;;  %v1190_v42 = vadd.f32 %v2028_v36, %v1112_v38 }
 0xc02   :  { %v909_v54 = vsel %vm157_vm1, %v905_v53, 0.0  ;;  %v904_v55 = vmul.f32 %v902_v52, %v902_v52 }
 0xc03   :  { %910 = vadd.xlane.f32.xlu0 %v909_v54 }
 0xc04   :  { %v906_v56 = vsel %vm157_vm1, %v904_v55, 0.0 }
 0xc05   :  { %907 = vadd.xlane.f32.xlu1 %v906_v56 }
 0xc8c   :  { %v911_v57 = vpop.xlane.xlu0 %910 }
 0xc8d   :  { %v913_v58 = vmul.f32 0.03125, %v911_v57 }
 0xc8e   :  { %v908_v59 = vpop.xlane.xlu1 %907 }
 0xc8f   :  { %v915_v62 = vadd.f32 1e-06, %v913_v58  ;;  %v912_v63 = vmul.f32 0.03125, %v908_v59 }
 0xc91   :  { %2111 = vrsqrt.f32 %v915_v62  ;;  %v914_v2 = vadd.f32 1e-06, %v912_v63 }
 0xc93   :  { %2113 = vrsqrt.f32 %v914_v2 }
 0xc9e   :  { %v2112_v5 = vpop.eup %2111 }
 0xc9f   :  { %v919_v6 = vmul.f32 %v2112_v5, %v903_v48 }
 0xca0   :  { %v2114_v8 = vpop.eup %2113 }
 0xca1   :  { %v925_v9 = vmul.f32 %v923_v3, %v919_v6  ;;  %v918_v10 = vmul.f32 %v2114_v8, %v902_v52 }
 0xca3   :  { %v931_v23 = vadd.f32 %v929_v7, %v925_v9  ;;  %v924_v11 = vmul.f32 %v923_v3, %v918_v10  ;;  %v1224_v10 = vrot.slane %v2606_v37, %v2574_v60 }
 0xca5   :  { %v933_v12 = vmax.f32 %v931_v23, 0.0  ;;  %v930_v13 = vadd.f32 %v929_v7, %v924_v11 }
 0xca7   :  { %935 = vrot.lane.b32.xlu0 %v933_v12, %s2331_s9  ;;  %v932_v25 = vmax.f32 %v930_v13, 0.0  ;;  %v1230_v12 = vrot.slane %v2606_v37, %v2577_v61  ;;  %v1247_v37 = vld [vmem:[#allocation13 + $0x38] sm:$0xff] }
 0xca8   :  { %2034 = vmatprep.subr.mxu1 %v1247_v37 }
 0xca9   :  { %2035 = vmatpush3.msra.mxu1 %v1247_v37 }
 0xd19   :  { %v936_v14 = vpop.permute.xlu0 %935 }
 0xd1a   :  { %v938_v15 = vsel %vm157_vm1, %v932_v25, %v936_v14 }
 0xd1b   :  { %1010 = vrot.lane.b32.xlu0 %v938_v15, %s2332_s30  ;;  %1995 = vmatpush3.msra.mxu0 %v938_v15 }
 0xd1c   :  { %1997 = vmatmul.mubr.msk.f32.vlgmr.msra.gmra.mxu0 %vm180_vm2, %v2451_v4  ;;  %1999 = vmatprep.subr.mxu0 %v717_v16 }
 0xd1d   :  { %2000 = vmatpush3.msra.mxu0 %v717_v16 }
 0xd1e   :  { %2001 = vmatprep.subr.mxu0 %v716_v17 }
 0xd1f   :  { %2002 = vmatpush3.msra.mxu0 %v716_v17 }
 0xd20   :  { %2003 = vmatprep.subr.mxu0 %v715_v18 }
 0xd21   :  { %2004 = vmatpush3.msra.mxu0 %v715_v18 }
 0xd22   :  { %2005 = vmatprep.subr.mxu0 %v714_v19 }
 0xd23   :  { %2006 = vmatpush3.msra.mxu0 %v714_v19 }
 0xd24   :  { %2007 = vmatprep.subr.mxu0 %v713_v20 }
 0xd25   :  { %2008 = vmatpush3.msra.mxu0 %v713_v20 }
 0xd26   :  { %2009 = vmatprep.subr.mxu0 %v712_v21 }
 0xd27   :  { %2010 = vmatpush3.msra.mxu0 %v712_v21  ;;  %v1246_v21 = vld [vmem:[#allocation13 + $0x30] sm:$0xff] }
 0xd28   :  { %2011 = vmatprep.subr.mxu0 %v711_v28  ;;  %2036 = vmatprep.subr.mxu1 %v1246_v21 }
 0xd29   :  { %2012 = vmatpush3.msra.mxu0 %v711_v28  ;;  %2037 = vmatpush3.msra.mxu1 %v1246_v21  ;;  %v1244_v28 = vld [vmem:[#allocation13 + $0x20] sm:$0xff]  ;;  %v1253_v21 = vld [vmem:[#allocation14 + $0x28] sm:$0xff] }
 0xd2a   :  { %2013 = vmatprep.subr.mxu0 %v710_v29 }
 0xd2b   :  { %2014 = vmatpush3.msra.mxu0 %v710_v29  ;;  %v1243_v29 = vld [vmem:[#allocation13 + $0x18] sm:$0xff] }
 0xd2c   :  { %2029 = vmatprep.subr.mxu0 %v2329_v0 }
 0xd8d   :  { %v1011_v33 = vpop.permute.xlu0 %1010 }
 0xddc   :  { %v1005_v1 = vpop.f32.mrf.mxu0 }
 0xddd   :  { %1014 = vrot.lane.b32.xlu1 %v1005_v1, %s2332_s30 }
 0xdde   :  { %v1998_v22 = vpop.f32.mrf.mxu0 }
 0xddf   :  { %v1245_v22 = vld [vmem:[#allocation13 + $0x28] sm:$0xff] }
 0xde0   :  { %2038 = vmatprep.subr.mxu1 %v1245_v22 }
 0xde1   :  { %1016 = vrot.lane.b32.xlu1 %v1005_v1, %s2331_s9  ;;  %2039 = vmatpush3.msra.mxu1 %v1245_v22  ;;  %v1252_v22 = vld [vmem:[#allocation14 + $0x20] sm:$0xff] }
 0xde2   :  { %2040 = vmatprep.subr.mxu1 %v1244_v28 }
 0xde3   :  { %2041 = vmatpush3.msra.mxu1 %v1244_v28  ;;  %v1251_v28 = vld [vmem:[#allocation14 + $0x18] sm:$0xff] }
 0xde4   :  { %2042 = vmatprep.subr.mxu1 %v1243_v29 }
 0xde5   :  { %2043 = vmatpush3.msra.mxu1 %v1243_v29 }
 0xe4f   :  { %v1015_v30 = vpop.permute.xlu1 %1014 }
 0xe50   :  { %1018 = vrot.lane.b32.xlu1 %v1015_v30, %s2331_s9 }
 0xe53   :  { %v1017_v31 = vpop.permute.xlu1 %1016 }
 0xe54   :  { %v1022_v32 = vsel %vm157_vm1, %v938_v15, %v1017_v31  ;;  %v1242_v31 = vld [vmem:[#allocation13 + $0x10] sm:$0xff] }
 0xe55   :  { %2015 = vmatprep.mubr.msk.f32.mxu0 %vm273_vm3, %v1022_v32  ;;  %v1241_v32 = vld [vmem:[#allocation13 + $0x8] sm:$0xff]  ;;  %2044 = vmatprep.subr.mxu1 %v1242_v31 }
 0xe56   :  { %2045 = vmatpush3.msra.mxu1 %v1242_v31 }
 0xe57   :  { %2046 = vmatprep.subr.mxu1 %v1241_v32 }
 0xe58   :  { %2047 = vmatpush3.msra.mxu1 %v1241_v32 }
 0xec2   :  { %v1019_v34 = vpop.permute.xlu1 %1018 }
 0xec3   :  { %v1023_v35 = vsel %vm157_vm1, %v1011_v33, %v1019_v34  ;;  %v1240_v33 = vld [vmem:[#allocation13] sm:$0xff] }
 0xec4   :  { %2016 = vmatmul.mubr.msk.f32.vlgmr.msra.gmra.mxu0 %vm273_vm3, %v1023_v35  ;;  %2048 = vmatprep.subr.mxu1 %v1240_v33  ;;  %v1259_v34 = vld [vmem:[%s2735_s11 + $0x18] sm:$0xff] }
 0xec5   :  { %2031 = vmatprep.mubr.msk.f32.mxu0 %vm2330_vm0, %v2329_v0  ;;  %2049 = vmatpush3.msra.mxu1 %v1240_v33 }
 0xec6   :  { %2077 = vmatprep.subr.mxu1 %v1259_v34 }
 0xf84   :  { %v2017_v41 = vpop.f32.mrf.mxu0 }
 0xf85   :  { %v1106_v43 = vadd.f32 %v2017_v41, %v1027_v39 }
 0xf86   :  { %v1100_v44 = vpop.f32.mrf.mxu0 }
 0xf87   :  { %v1101_v46 = vadd.f32 %v1100_v44, %v1027_v39  ;;  %v1194_v47 = vadd.f32 %v1190_v42, %v1106_v43  ;;  %v1258_v42 = vld [vmem:[%s2735_s11 + $0x10] sm:$0xff]  ;;  %v1257_v43 = vld [vmem:[%s2735_s11 + $0x8] sm:$0xff]  ;;  %v1256_v44 = vld [vmem:[%s2735_s11] sm:$0xff] }
 0xf89   :  { %v1198_v48 = vsel %vm157_vm1, %v1194_v47, 0.0  ;;  %v1193_v51 = vadd.f32 %v1185_v45, %v1101_v46  ;;  %v2680_v45 = vld [vmem:[%s2726_s2 + $0x10] sm:$0xff]  ;;  %s2333_s2 = smov [#allocation16]  }
 0xf8a   :  { %1199 = vadd.xlane.f32.xlu0 %v1198_v48  ;;  %v1350_v46 = vrot.slane %v2680_v45, %v2495_v24  ;;  %s1779_s11 = sshll.u32 %s2333_s2, 4  ;;  %s1780_s11 = int_to_ptr.vmem [resolvable:$true] %s1779_s11 }
 0xf8b   :  { %v1195_v52 = vsel %vm157_vm1, %v1193_v51, 0.0  ;;  %p2292_p13 = scmp.lt.s32.totalorder %s1780_s11, %s1780_s11 }
 0xf8c   :  { %1196 = vadd.xlane.f32.xlu1 %v1195_v52 }
0x1013   :  { %v1200_v53 = vpop.xlane.xlu0 %1199 }
0x1014   :  { %v1202_v54 = vmul.f32 0.03125, %v1200_v53 }
0x1015   :  { %v1197_v55 = vpop.xlane.xlu1 %1196 }
0x1016   :  { %v1204_v56 = vsub.f32 %v1194_v47, %v1202_v54  ;;  %v1201_v57 = vmul.f32 0.03125, %v1197_v55 }
0x1018   :  { %v1203_v58 = vsub.f32 %v1193_v51, %v1201_v57  ;;  %v1206_v59 = vmul.f32 %v1204_v56, %v1204_v56 }
0x101a   :  { %v1210_v62 = vsel %vm157_vm1, %v1206_v59, 0.0  ;;  %v1205_v63 = vmul.f32 %v1203_v58, %v1203_v58 }
0x101b   :  { %1211 = vadd.xlane.f32.xlu0 %v1210_v62 }
0x101c   :  { %v1207_v2 = vsel %vm157_vm1, %v1205_v63, 0.0 }
0x101f   :  { %1208 = vadd.xlane.f32.xlu0 %v1207_v2 }
0x10a4   :  { %v1212_v3 = vpop.xlane.xlu0 %1211 }
0x10a5   :  { %v1214_v5 = vmul.f32 0.03125, %v1212_v3 }
0x10a7   :  { %v1216_v6 = vadd.f32 1e-06, %v1214_v5 }
0x10a8   :  { %v1209_v7 = vpop.xlane.xlu0 %1208 }
0x10a9   :  { %2115 = vrsqrt.f32 %v1216_v6  ;;  %v1213_v8 = vmul.f32 0.03125, %v1209_v7 }
0x10ab   :  { %v1215_v9 = vadd.f32 1e-06, %v1213_v8 }
0x10ad   :  { %2117 = vrsqrt.f32 %v1215_v9 }
0x10b6   :  { %v2116_v23 = vpop.eup %2115 }
0x10b7   :  { %v1220_v11 = vmul.f32 %v2116_v23, %v1204_v56  ;;  %v1461_v23 = vrot.slane %v2680_v45, %v2509_v49  ;;  %v1255_v49 = vld [vmem:[#allocation14 + $0x38] sm:$0xff] }
0x10b9   :  { %v1226_v13 = vmul.f32 %v1224_v10, %v1220_v11 }
0x10ba   :  { %v2118_v25 = vpop.eup %2117 }
0x10bb   :  { %v2645_v14 = vadd.f32 %v1230_v12, %v1226_v13  ;;  %v1219_v15 = vmul.f32 %v2118_v25, %v1203_v58  ;;  %v1467_v13 = vrot.slane %v2680_v45, %v2512_v50  ;;  %v1254_v50 = vld [vmem:[#allocation14 + $0x30] sm:$0xff] }
0x10bd   :  { %v1234_v16 = vmax.f32 %v2645_v14, 0.0  ;;  %v1225_v17 = vmul.f32 %v1224_v10, %v1219_v15 }
0x10bf   :  { %1236 = vrot.lane.b32.xlu1 %v1234_v16, %s2331_s9  ;;  %v1231_v18 = vadd.f32 %v1230_v12, %v1225_v17 }
0x10c1   :  { %v1233_v19 = vmax.f32 %v1231_v18, 0.0 }
0x1131   :  { %v1237_v20 = vpop.permute.xlu1 %1236 }
0x1132   :  { %v1239_v1 = vsel %vm157_vm1, %v1233_v19, %v1237_v20 }
0x1133   :  { %2030 = vmatpush3.msra.mxu0 %v1239_v1 }
0x1134   :  { %2032 = vmatmul.mubr.msk.f32.vlgmr.msra.gmra.mxu0 %vm180_vm2, %v2451_v4  ;;  %2053 = vmatprep.subr.mxu0 %v2329_v0 }
0x1135   :  { %2055 = vmatprep.mubr.msk.f32.mxu0 %vm2330_vm0, %v2329_v0 }
0x11f4   :  { %v1328_v30 = vpop.f32.mrf.mxu0 }
0x11f5   :  { %1339 = vrot.lane.b32.xlu1 %v1328_v30, %s2331_s9  ;;  %1337 = vrot.lane.b32.xlu0 %v1328_v30, %s2332_s30  ;;  %v1250_v30 = vld [vmem:[#allocation14 + $0x10] sm:$0xff] }
0x11f6   :  { %v2033_v0 = vpop.f32.mrf.mxu0 }
0x11f7   :  { %v1248_v0 = vld [vmem:[#allocation14] sm:$0xff] }
0x11f9   :  { %1333 = vrot.lane.b32.xlu1 %v1239_v1, %s2332_s30 }
0x1267   :  { %v1340_v35 = vpop.permute.xlu1 %1339  ;;  %v1338_v36 = vpop.permute.xlu0 %1337 }
0x1268   :  { %v1345_v38 = vsel %vm157_vm1, %v1239_v1, %v1340_v35  ;;  %1341 = vrot.lane.b32.xlu0 %v1338_v36, %s2331_s9 }
0x1269   :  { %2050 = vmatprep.mubr.msk.f32.mxu1 %vm273_vm3, %v1345_v38 }
0x126b   :  { %v1334_v39 = vpop.permute.xlu1 %1333 }
0x12da   :  { %v1342_v40 = vpop.permute.xlu0 %1341 }
0x12db   :  { %v1346_v41 = vsel %vm157_vm1, %v1334_v39, %v1342_v40  ;;  %v1650_v40 = vrot.slane %v2680_v45, %v2560_v26 }
0x12dc   :  { %2051 = vmatmul.mubr.msk.f32.vlgmr.msra.gmra.mxu1 %vm273_vm3, %v1346_v41  ;;  %v1565_v41 = vrot.slane %v2680_v45, %v2563_v27 }
0x12dd   :  { %2078 = vmatpush3.msra.mxu1 %v1259_v34  ;;  %2085 = vmatprep.mubr.msk.f32.mxu1 %vm157_vm1, %v1233_v19 }
0x12de   :  { %2079 = vmatprep.subr.mxu1 %v1258_v42 }
0x12df   :  { %2080 = vmatpush3.msra.mxu1 %v1258_v42 }
0x12e0   :  { %2081 = vmatprep.subr.mxu1 %v1257_v43 }
0x12e1   :  { %2082 = vmatpush3.msra.mxu1 %v1257_v43 }
0x12e2   :  { %2083 = vmatprep.subr.mxu1 %v1256_v44 }
0x12e3   :  { %2084 = vmatpush3.msra.mxu1 %v1256_v44 }
0x12e4   :  { %2086 = vmatmul.mubr.msk.f32.vlgmr.msra.gmra.mxu1 %vm157_vm1, %v1234_v16 }
0x139c   :  { %v2052_v47 = vpop.f32.mrf.mxu1 }
0x139d   :  { %v1429_v48 = vadd.f32 %v2052_v47, %v1350_v46 }
0x139e   :  { %v1423_v51 = vpop.f32.mrf.mxu1 }
0x139f   :  { %v1424_v52 = vadd.f32 %v1423_v51, %v1350_v46  ;;  %v1435_v53 = vsel %vm157_vm1, %v1429_v48, 0.0 }
0x13a0   :  { %1436 = vadd.xlane.f32.xlu1 %v1435_v53 }
0x13a1   :  { %v1432_v54 = vsel %vm157_vm1, %v1424_v52, 0.0 }
0x13a2   :  { %1433 = vadd.xlane.f32.xlu0 %v1432_v54 }
0x13a4   :  { %v2087_v39 = vpop.f32.mrf.mxu1 }
0x13a5   :  { %v1728_v44 = vadd.f32 %v2087_v39, %v1650_v40 }
0x13a6   :  { %v1722_v42 = vpop.f32.mrf.mxu1 }
0x1429   :  { %v1437_v55 = vpop.xlane.xlu1 %1436 }
0x142a   :  { %v1439_v56 = vmul.f32 0.03125, %v1437_v55 }
0x142b   :  { %v1434_v57 = vpop.xlane.xlu0 %1433 }
0x142c   :  { %v1441_v58 = vsub.f32 %v1429_v48, %v1439_v56  ;;  %v1438_v59 = vmul.f32 0.03125, %v1434_v57  ;;  %v1723_v48 = vadd.f32 %v1722_v42, %v1650_v40 }
0x142e   :  { %v1440_v62 = vsub.f32 %v1424_v52, %v1438_v59  ;;  %v1443_v63 = vmul.f32 %v1441_v58, %v1441_v58 }
0x1430   :  { %v1447_v2 = vsel %vm157_vm1, %v1443_v63, 0.0  ;;  %v1442_v24 = vmul.f32 %v1440_v62, %v1440_v62 }
0x1431   :  { %1448 = vadd.xlane.f32.xlu0 %v1447_v2 }
0x1432   :  { %v1444_v3 = vsel %vm157_vm1, %v1442_v24, 0.0 }
0x1433   :  { %1445 = vadd.xlane.f32.xlu1 %v1444_v3 }
0x14ba   :  { %v1449_v5 = vpop.xlane.xlu0 %1448 }
0x14bb   :  { %v1451_v6 = vmul.f32 0.03125, %v1449_v5 }
0x14bc   :  { %v1446_v7 = vpop.xlane.xlu1 %1445 }
0x14bd   :  { %v1453_v8 = vadd.f32 1e-06, %v1451_v6  ;;  %v1450_v9 = vmul.f32 0.03125, %v1446_v7 }
0x14bf   :  { %2119 = vrsqrt.f32 %v1453_v8  ;;  %v1452_v10 = vadd.f32 1e-06, %v1450_v9 }
0x14c1   :  { %2121 = vrsqrt.f32 %v1452_v10  ;;  %v1762_v10 = vrot.slane %v2680_v45, %v2574_v60 }
0x14cc   :  { %v2120_v11 = vpop.eup %2119 }
0x14cd   :  { %v1457_v12 = vmul.f32 %v2120_v11, %v1441_v58 }
0x14ce   :  { %v2122_v25 = vpop.eup %2121 }
0x14cf   :  { %v1463_v14 = vmul.f32 %v1461_v23, %v1457_v12  ;;  %v1456_v15 = vmul.f32 %v2122_v25, %v1440_v62  ;;  %v1768_v12 = vrot.slane %v2680_v45, %v2577_v61 }
0x14d1   :  { %v1469_v16 = vadd.f32 %v1467_v13, %v1463_v14  ;;  %v1462_v17 = vmul.f32 %v1461_v23, %v1456_v15 }
0x14d3   :  { %v1471_v18 = vmax.f32 %v1469_v16, 0.0  ;;  %v1468_v19 = vadd.f32 %v1467_v13, %v1462_v17 }
0x14d5   :  { %1473 = vrot.lane.b32.xlu0 %v1471_v18, %s2331_s9  ;;  %v1470_v20 = vmax.f32 %v1468_v19, 0.0 }
0x1547   :  { %v1474_v1 = vpop.permute.xlu0 %1473 }
0x1548   :  { %v1476_v37 = vsel %vm157_vm1, %v1470_v20, %v1474_v1 }
0x1549   :  { %1548 = vrot.lane.b32.xlu0 %v1476_v37, %s2332_s30  ;;  %2054 = vmatpush3.msra.mxu0 %v1476_v37 }
0x154a   :  { %2056 = vmatmul.mubr.msk.f32.vlgmr.msra.gmra.mxu0 %vm180_vm2, %v2451_v4  ;;  %2058 = vmatprep.subr.mxu0 %v1255_v49  ;;  %v1249_v4 = vld [vmem:[#allocation14 + $0x8] sm:$0xff] }
0x154b   :  { %2059 = vmatpush3.msra.mxu0 %v1255_v49 }
0x154c   :  { %2060 = vmatprep.subr.mxu0 %v1254_v50 }
0x154d   :  { %2061 = vmatpush3.msra.mxu0 %v1254_v50 }
0x154e   :  { %2062 = vmatprep.subr.mxu0 %v1253_v21 }
0x154f   :  { %2063 = vmatpush3.msra.mxu0 %v1253_v21 }
0x1550   :  { %2064 = vmatprep.subr.mxu0 %v1252_v22 }
0x1551   :  { %2065 = vmatpush3.msra.mxu0 %v1252_v22 }
0x1552   :  { %2066 = vmatprep.subr.mxu0 %v1251_v28 }
0x1553   :  { %2067 = vmatpush3.msra.mxu0 %v1251_v28 }
0x1554   :  { %2068 = vmatprep.subr.mxu0 %v1250_v30 }
0x1555   :  { %2069 = vmatpush3.msra.mxu0 %v1250_v30 }
0x1556   :  { %2070 = vmatprep.subr.mxu0 %v1249_v4 }
0x1557   :  { %2071 = vmatpush3.msra.mxu0 %v1249_v4 }
0x1558   :  { %2072 = vmatprep.subr.mxu0 %v1248_v0 }
0x1559   :  { %2073 = vmatpush3.msra.mxu0 %v1248_v0 }
0x15bb   :  { %v1549_v35 = vpop.permute.xlu0 %1548 }
0x160a   :  { %v1543_v29 = vpop.f32.mrf.mxu0 }
0x160b   :  { %1552 = vrot.lane.b32.xlu1 %v1543_v29, %s2332_s30 }
0x160c   :  { %v2057_v31 = vpop.f32.mrf.mxu0 }
0x160f   :  { %1554 = vrot.lane.b32.xlu1 %v1543_v29, %s2331_s9 }
0x167d   :  { %v1553_v32 = vpop.permute.xlu1 %1552 }
0x167e   :  { %1556 = vrot.lane.b32.xlu1 %v1553_v32, %s2331_s9  ;;  %s2287_s9 = scalar_lea.vmem %s1780_s11, 256 }
0x167f   :  { %p2288_p12 = scmp.ne.s32.totalorder %s1780_s11, %s2287_s9  ;;  %p2293_p0 = scmp.lt.s32.totalorder %s2287_s9, %s2287_s9 }
0x1681   :  { %v1555_v33 = vpop.permute.xlu1 %1554  ;;  %p2294_p1 = por %p2293_p0, %p2292_p13 }
0x1682   :  { %v1560_v34 = vsel %vm157_vm1, %v1476_v37, %v1555_v33 }
0x1683   :  { %2074 = vmatprep.mubr.msk.f32.mxu0 %vm273_vm3, %v1560_v34  ;;  %p2295_p2 = pnand %p2294_p1, %p2288_p12 }
0x16f0   :  { %v1557_v36 = vpop.permute.xlu1 %1556 }
0x16f1   :  { %v1561_v38 = vsel %vm157_vm1, %v1549_v35, %v1557_v36 }
0x16f2   :  { %2075 = vmatmul.mubr.msk.f32.vlgmr.msra.gmra.mxu0 %vm273_vm3, %v1561_v38 }
0x17b2   :  { %v2076_v43 = vpop.f32.mrf.mxu0 }
0x17b3   :  { %v1644_v46 = vadd.f32 %v2076_v43, %v1565_v41 }
0x17b4   :  { %v1638_v47 = vpop.f32.mrf.mxu0 }
0x17b5   :  { %v1639_v51 = vadd.f32 %v1638_v47, %v1565_v41  ;;  %v1732_v52 = vadd.f32 %v1728_v44, %v1644_v46 }
0x17b7   :  { %v1736_v53 = vsel %vm157_vm1, %v1732_v52, 0.0  ;;  %v1731_v54 = vadd.f32 %v1723_v48, %v1639_v51 }
0x17b8   :  { %1737 = vadd.xlane.f32.xlu1 %v1736_v53 }
0x17b9   :  { %v1733_v55 = vsel %vm157_vm1, %v1731_v54, 0.0 }
0x17ba   :  { %1734 = vadd.xlane.f32.xlu0 %v1733_v55 }
0x1841   :  { %v1738_v56 = vpop.xlane.xlu1 %1737 }
0x1842   :  { %v1740_v26 = vmul.f32 0.03125, %v1738_v56 }
0x1843   :  { %v1735_v57 = vpop.xlane.xlu0 %1734 }
0x1844   :  { %v1739_v58 = vmul.f32 0.03125, %v1735_v57  ;;  %v1742_v27 = vsub.f32 %v1732_v52, %v1740_v26 }
0x1846   :  { %v1741_v59 = vsub.f32 %v1731_v54, %v1739_v58  ;;  %v1744_v2 = vmul.f32 %v1742_v27, %v1742_v27 }
0x1848   :  { %v1743_v62 = vmul.f32 %v1741_v59, %v1741_v59  ;;  %v1748_v24 = vsel %vm157_vm1, %v1744_v2, 0.0 }
0x184a   :  { %v1745_v63 = vsel %vm157_vm1, %v1743_v62, 0.0 }
0x184b   :  { %1746 = vadd.xlane.f32.xlu0 %v1745_v63 }
0x184f   :  { %1749 = vadd.xlane.f32.xlu0 %v1748_v24 }
0x18d4   :  { %v1747_v3 = vpop.xlane.xlu0 %1746 }
0x18d5   :  { %v1751_v5 = vmul.f32 0.03125, %v1747_v3 }
0x18d7   :  { %v1753_v6 = vadd.f32 1e-06, %v1751_v5 }
0x18d8   :  { %v1750_v7 = vpop.xlane.xlu0 %1749 }
0x18d9   :  { %2123 = vrsqrt.f32 %v1753_v6  ;;  %v1752_v8 = vmul.f32 0.03125, %v1750_v7 }
0x18db   :  { %v1754_v9 = vadd.f32 1e-06, %v1752_v8 }
0x18dd   :  { %2125 = vrsqrt.f32 %v1754_v9 }
0x18e6   :  { %v2124_v23 = vpop.eup %2123 }
0x18e7   :  { %v1757_v11 = vmul.f32 %v2124_v23, %v1741_v59 }
0x18e9   :  { %v1763_v13 = vmul.f32 %v1762_v10, %v1757_v11 }
0x18ea   :  { %v2126_v25 = vpop.eup %2125 }
0x18eb   :  { %v1758_v14 = vmul.f32 %v2126_v25, %v1742_v27  ;;  %v1769_v15 = vadd.f32 %v1768_v12, %v1763_v13 }
0x18ed   :  { %v1764_v16 = vmul.f32 %v1762_v10, %v1758_v14  ;;  %1771 = vst.msk [vmem:[#allocation16] sm:$0xff] %vm157_vm1, %v1769_v15 }
0x18ef   :  { %v1770_v17 = vadd.f32 %v1768_v12, %v1764_v16 }
0x18f1   :  { %1773 = vst.msk [vmem:[#allocation16 + $0x8] sm:$0xff] %vm157_vm1, %v1770_v17 }
0x18f2   :  { %2298 = shalt.err (!%p2295_p2)
}
0x18f3   :  { %1785 = dma.vmem_to_hbm [thread:$0]  %s1780_s11, 256, %s2736_s12, [#allocation4], %s2322_s13, %s2322_s13, %s2323_s14  }
0x18f4   :  { %2317 = dma.done.wait [#allocation4], 256  }
0x18f5   :  { %2318 = vsyncadd [#allocation4], 4294967040 }
0x18f6   :  { %1789 = vsyncpa [#allocation3], 1 }
0x18f7   :  { %1790 = vsyncpa [#allocation6], 1 }
0x18f8   :  { %1791 = vsyncpa [#allocation9], 1 }
0x18f9   :  { %1792 = vsyncpa [#allocation12], 1 }
0x18fa   :  { %1793 = vsyncpa [#allocation15], 1 }
0x18fb   :  { %1794 = vsyncpa [#allocation4], 1 }

</bundles_post_ra>
